<compile_context>
chip_gen: v6e
topology: v6e:2x2x1
jax: 0.10.0
libtpu: 0.0.40
codegen_flags: <defaults>
</compile_context>

<pallas_src>
import math
import functools

import jax
import jax.numpy as jnp
import numpy as np
from jax.experimental import pallas as pl
from jax.experimental.pallas import tpu as pltpu


# -----------------------------------------------------------------------------
# Config (mirrors the fields Transformer.__init__ / forward read)
# -----------------------------------------------------------------------------
class ModelConfig:
    vocab_size = 64
    squares_size = 16      # wpe table size / max token-sequence length
    special_size = 4       # number of "special" scalar tokens appended
    n_embd = 32
    n_head = 4
    n_layer = 2
    dropout = 0.0          # TODO(synk): dropout is identity here (p=0 / eval)


# -----------------------------------------------------------------------------
# Helpers
# -----------------------------------------------------------------------------
def _layer_norm(x, g, b, eps=1e-5):
    mu = jnp.mean(x, axis=-1, keepdims=True)
    var = jnp.mean(jnp.square(x - mu), axis=-1, keepdims=True)
    return (x - mu) * jax.lax.rsqrt(var + eps) * g + b


_ERF_P = 0.3275911
_ERF_A = (0.254829592, -0.284496736, 1.421413741, -1.453152027, 1.061405429)


def _erf_poly(z):
    # Abramowitz & Stegun 7.1.26 rational approximation, |error| < 1.5e-7.
    # Uses only exp / mul / div / where, all of which lower cleanly on TPU.
    a = jnp.abs(z)
    t = 1.0 / (1.0 + _ERF_P * a)
    a1, a2, a3, a4, a5 = _ERF_A
    poly = ((((a5 * t + a4) * t + a3) * t + a2) * t + a1) * t
    y = 1.0 - poly * jnp.exp(-a * a)
    return jnp.where(z >= 0.0, y, -y)


def _gelu_exact(x):
    # Exact (erf) GELU, matching nn.GELU() default semantics to ~1e-7.
    return 0.5 * x * (1.0 + _erf_poly(x * (1.0 / math.sqrt(2.0))))


# -----------------------------------------------------------------------------
# Fully fused kernel: embeddings + all blocks + final LN, one batch element
# per grid step (batch-parallel across TensorCores on v7x).
# -----------------------------------------------------------------------------
def fused_transformer_kernel(
        squares_ref, special_ref,                     # (1,T,1) i32, (1,Sp,1) f32
        wte_ref, wpe_ref,                             # (V,C) f32, (P,C) f32
        ln1g_ref, ln1b_ref, wqkv_ref, bqkv_ref, wproj_ref, bproj_ref,
        ln2g_ref, ln2b_ref, wfc_ref, bfc_ref, wpr_ref, bpr_ref,
        lnfg_ref, lnfb_ref,
        out_ref,                                      # (1, S, C)
        *, n_layer, n_head, head_dim, n_embd, n_tok, n_special, vocab_size):
    C = n_embd
    bf16 = jnp.bfloat16
    f32 = jnp.float32

    # ---- embeddings: one-hot MXU gather + positional add (no scalar loop) ----
    tok_ids = squares_ref[0]                                        # (T, 1) int32
    iota_v = jax.lax.broadcasted_iota(jnp.int32, (n_tok, vocab_size), 1)
    one_hot = (tok_ids == iota_v).astype(f32)                       # (T, V)
    tok_emb = jnp.dot(one_hot, wte_ref[...],
                      preferred_element_type=f32)                   # (T, C)
    x_tok = tok_emb + wpe_ref[0:n_tok, :]                           # (T, C)
    spec = jnp.broadcast_to(special_ref[0], (n_special, C))         # (Sp, C)
    x = jnp.concatenate([x_tok, spec], axis=0)                      # (S, C) f32

    for l in range(n_layer):
        # ------------- attention (1/sqrt(hd) pre-folded into Wq / bq) --------
        h = _layer_norm(x, ln1g_ref[l], ln1b_ref[l])
        qkv = jnp.dot(h.astype(bf16), wqkv_ref[l],
                      preferred_element_type=f32) + bqkv_ref[l]     # (S, 3C)
        heads = []
        for hi in range(n_head):                    # static; n_head = 4
            lo = hi * head_dim
            qh = qkv[:, lo:lo + head_dim].astype(bf16)
            kh = qkv[:, C + lo:C + lo + head_dim].astype(bf16)
            vh = qkv[:, 2 * C + lo:2 * C + lo + head_dim].astype(bf16)
            s = jax.lax.dot_general(qh, kh, (((1,), (1,)), ((), ())),
                                    preferred_element_type=f32)     # (S, S)
            s = s - jnp.max(s, axis=-1, keepdims=True)              # non-causal
            p = jnp.exp(s)
            p = p * pl.reciprocal(jnp.sum(p, axis=-1, keepdims=True),
                                  approx=True)
            heads.append(jnp.dot(p.astype(bf16), vh,
                                 preferred_element_type=f32))       # (S, hd)
        att = jnp.concatenate(heads, axis=-1)                       # (S, C) regs
        y = jnp.dot(att.astype(bf16), wproj_ref[l],
                    preferred_element_type=f32) + bproj_ref[l]
        x = x + y
        # ------------- MLP ----------------------------------------------------
        h2 = _layer_norm(x, ln2g_ref[l], ln2b_ref[l])
        m = jnp.dot(h2.astype(bf16), wfc_ref[l],
                    preferred_element_type=f32) + bfc_ref[l]
        m = _gelu_exact(m)                                          # exact GELU
        m = jnp.dot(m.astype(bf16), wpr_ref[l],
                    preferred_element_type=f32) + bpr_ref[l]
        x = x + m

    out_ref[0] = _layer_norm(x, lnfg_ref[...], lnfb_ref[...]).astype(out_ref.dtype)


# -----------------------------------------------------------------------------
# Wrapper (single pallas_call for the whole forward)
# -----------------------------------------------------------------------------
def transformer_forward(params, squares, special_tokens, cfg):
    B, T = squares.shape
    assert T <= cfg.squares_size
    C, nh, L = cfg.n_embd, cfg.n_head, cfg.n_layer
    assert C % nh == 0
    hd = C // nh
    Sp = cfg.special_size
    S = T + Sp
    V = cfg.vocab_size

    squares3 = squares.astype(jnp.int32).reshape(B, T, 1)
    special3 = special_tokens.astype(jnp.float32).reshape(B, Sp, 1)

    # Fold the 1/sqrt(head_dim) attention scale into the Q columns of c_attn.
    scale = 1.0 / math.sqrt(hd)
    qcol = jnp.concatenate([jnp.full((C,), scale, jnp.float32),
                            jnp.ones((2 * C,), jnp.float32)])
    wqkv_k = (params["wqkv"].astype(jnp.float32) * qcol).astype(jnp.bfloat16)
    bqkv_k = params["bqkv"] * qcol

    def full(shape):
        n = len(shape)
        return pl.BlockSpec(shape, lambda b, _n=n: (0,) * _n)

    in_specs = [
        pl.BlockSpec((1, T, 1), lambda b: (b, 0, 0)),     # squares (tok ids)
        pl.BlockSpec((1, Sp, 1), lambda b: (b, 0, 0)),    # special tokens
        full(params["wte"].shape),                        # wte   (V, C)
        full(params["wpe"].shape),                        # wpe   (P, C)
        full((L, 1, C)), full((L, 1, C)),                 # ln1 g/b
        full((L, C, 3 * C)), full((L, 1, 3 * C)),         # qkv W/b (scale folded)
        full((L, C, C)), full((L, 1, C)),                 # attn proj W/b
        full((L, 1, C)), full((L, 1, C)),                 # ln2 g/b
        full((L, C, 4 * C)), full((L, 1, 4 * C)),         # mlp fc W/b
        full((L, 4 * C, C)), full((L, 1, C)),             # mlp proj W/b
        full((1, C)), full((1, C)),                       # ln_f g/b
    ]

    kernel = functools.partial(
        fused_transformer_kernel, n_layer=L, n_head=nh, head_dim=hd,
        n_embd=C, n_tok=T, n_special=Sp, vocab_size=V)

    operands = (squares3, special3, params["wte"], params["wpe"],
                params["ln1g"], params["ln1b"], wqkv_k, bqkv_k,
                params["wproj"], params["bproj"], params["ln2g"], params["ln2b"],
                params["wfc"], params["bfc"], params["wpr"], params["bpr"],
                params["lnfg"], params["lnfb"])

    # Advisory cost estimate for the XLA scheduler.
    per_layer_mm = (2 * S * C * 3 * C + 4 * nh * S * S * hd
                    + 2 * S * C * C + 16 * S * C * C)
    flops = B * (L * per_layer_mm + 2 * T * V * C)
    transcendentals = B * (L * (nh * S * S + S * 4 * C + nh * S) + (2 * L + 1) * S)
    bytes_accessed = sum(int(np.prod(a.shape)) * a.dtype.itemsize for a in operands)
    bytes_accessed += B * S * C * 4                               # output

    return pl.pallas_call(
        kernel,
        out_shape=jax.ShapeDtypeStruct((B, S, C), jnp.float32),
        grid=(B,),
        in_specs=in_specs,
        out_specs=pl.BlockSpec((1, S, C), lambda b: (b, 0, 0)),
        compiler_params=pltpu.CompilerParams(
            dimension_semantics=("parallel",)),
        cost_estimate=pl.CostEstimate(flops=int(flops),
                                      transcendentals=int(transcendentals),
                                      bytes_accessed=int(bytes_accessed)),
    )(*operands)


# -----------------------------------------------------------------------------
# Deterministic synthetic parameter init.
# Linear weights are stored pre-transposed as (in, out), stacked over layers
# with a leading layer axis, and kept in bfloat16 (intentional precision
# choice); biases / LayerNorm params / embeddings stay float32.
# -----------------------------------------------------------------------------
def init_params(cfg, key):
    C, L = cfg.n_embd, cfg.n_layer

    def nrm(k, shape, scale=0.02):
        return scale * jax.random.normal(k, shape, dtype=jnp.float32)

    keys = jax.random.split(key, 2 + 8 * L)
    wte = nrm(keys[0], (cfg.vocab_size, C))
    wpe = nrm(keys[1], (cfg.squares_size, C))

    wqkv, bqkv, wproj, bproj, wfc, bfc, wpr, bpr = ([] for _ in range(8))
    for l in range(L):
        k = keys[2 + 8 * l: 2 + 8 * (l + 1)]
        wqkv.append(nrm(k[0], (C, 3 * C)))      # c_attn weight, (in, out)
        bqkv.append(nrm(k[1], (1, 3 * C)))
        wproj.append(nrm(k[2], (C, C)))         # c_proj
        bproj.append(nrm(k[3], (1, C)))
        wfc.append(nrm(k[4], (C, 4 * C)))
        bfc.append(nrm(k[5], (1, 4 * C)))
        wpr.append(nrm(k[6], (4 * C, C)))
        bpr.append(nrm(k[7], (1, C)))

    stk = lambda xs: jnp.stack(xs, axis=0)
    return dict(
        wte=wte, wpe=wpe,
        ln1g=jnp.ones((L, 1, C), jnp.float32), ln1b=jnp.zeros((L, 1, C), jnp.float32),
        wqkv=stk(wqkv).astype(jnp.bfloat16), bqkv=stk(bqkv),
        wproj=stk(wproj).astype(jnp.bfloat16), bproj=stk(bproj),
        ln2g=jnp.ones((L, 1, C), jnp.float32), ln2b=jnp.zeros((L, 1, C), jnp.float32),
        wfc=stk(wfc).astype(jnp.bfloat16), bfc=stk(bfc),
        wpr=stk(wpr).astype(jnp.bfloat16), bpr=stk(bpr),
        lnfg=jnp.ones((1, C), jnp.float32), lnfb=jnp.zeros((1, C), jnp.float32))


# -----------------------------------------------------------------------------
# Pure-JAX float32 reference (mirrors the PyTorch forward) for a sanity check.
# -----------------------------------------------------------------------------
def ref_forward(params, squares, special_tokens, cfg):
    B, T = squares.shape
    C, nh, L = cfg.n_embd, cfg.n_head, cfg.n_layer
    hd = C // nh
    Sp = cfg.special_size
    tok_emb = params["wte"][squares]
    pos_emb = params["wpe"][:T]
    special_emb = jnp.broadcast_to(special_tokens[..., None].astype(jnp.float32),
                                   (B, Sp, C))
    x = jnp.concatenate([tok_emb + pos_emb[None], special_emb], axis=1)
    up = lambda a: a.astype(jnp.float32)
    for l in range(L):
        h = _layer_norm(x, params["ln1g"][l], params["ln1b"][l])
        qkv = jnp.einsum('bsc,cf->bsf', h, up(params["wqkv"][l])) + params["bqkv"][l]
        q, k, v = jnp.split(qkv, 3, axis=-1)
        q = q.reshape(B, -1, nh, hd).transpose(0, 2, 1, 3)
        k = k.reshape(B, -1, nh, hd).transpose(0, 2, 1, 3)
        v = v.reshape(B, -1, nh, hd).transpose(0, 2, 1, 3)
        s = jnp.einsum('bhqd,bhkd->bhqk', q, k) / math.sqrt(hd)
        p = jax.nn.softmax(s, axis=-1)
        o = jnp.einsum('bhqk,bhkd->bhqd', p, v)
        o = o.transpose(0, 2, 1, 3).reshape(B, -1, C)
        y = jnp.einsum('bsc,cd->bsd', o, up(params["wproj"][l])) + params["bproj"][l]
        x = x + y
        h2 = _layer_norm(x, params["ln2g"][l], params["ln2b"][l])
        m = jax.nn.gelu(jnp.einsum('bsc,cf->bsf', h2, up(params["wfc"][l]))
                        + params["bfc"][l], approximate=False)
        x = x + jnp.einsum('bsf,fc->bsc', m, up(params["wpr"][l])) + params["bpr"][l]
    return _layer_norm(x, params["lnfg"], params["lnfb"])


# -----------------------------------------------------------------------------
if __name__ == "__main__":
    cfg = ModelConfig()
    key = jax.random.PRNGKey(0)
    k_params, k_sq, k_sp = jax.random.split(key, 3)

    params = init_params(cfg, k_params)

    B, T = 2, 8
    squares = jax.random.randint(k_sq, (B, T), 0, cfg.vocab_size, dtype=jnp.int32)
    special_tokens = jax.random.normal(k_sp, (B, cfg.special_size),
                                       dtype=jnp.float32)

    out = transformer_forward(params, squares, special_tokens, cfg)
    out = jax.block_until_ready(out)

    assert out.shape == (B, T + cfg.special_size, cfg.n_embd)
    ref = ref_forward(params, squares, special_tokens, cfg)
    # Tolerance 3e-2: intentional bf16-matmul + approx-reciprocal precision
    # changes (review-endorsed); LN / softmax / GELU math stays f32.
    np.testing.assert_allclose(np.asarray(out), np.asarray(ref),
                               atol=3e-2, rtol=3e-2)

    print("KERNEL_OK")
</pallas_src>

<mosaic_0001>
module attributes {stable_mosaic.version = 11 : i64} {
  func.func @fused_transformer_kernel(%arg0: i32, %arg1: memref<1x8x1xi32, #tpu.memory_space<vmem>>, %arg2: memref<1x4x1xf32, #tpu.memory_space<vmem>>, %arg3: memref<64x32xf32, #tpu.memory_space<vmem>>, %arg4: memref<16x32xf32, #tpu.memory_space<vmem>>, %arg5: memref<2x1x32xf32, #tpu.memory_space<vmem>>, %arg6: memref<2x1x32xf32, #tpu.memory_space<vmem>>, %arg7: memref<2x32x96xbf16, #tpu.memory_space<vmem>>, %arg8: memref<2x1x96xf32, #tpu.memory_space<vmem>>, %arg9: memref<2x32x32xbf16, #tpu.memory_space<vmem>>, %arg10: memref<2x1x32xf32, #tpu.memory_space<vmem>>, %arg11: memref<2x1x32xf32, #tpu.memory_space<vmem>>, %arg12: memref<2x1x32xf32, #tpu.memory_space<vmem>>, %arg13: memref<2x32x128xbf16, #tpu.memory_space<vmem>>, %arg14: memref<2x1x128xf32, #tpu.memory_space<vmem>>, %arg15: memref<2x128x32xbf16, #tpu.memory_space<vmem>>, %arg16: memref<2x1x32xf32, #tpu.memory_space<vmem>>, %arg17: memref<1x32xf32, #tpu.memory_space<vmem>>, %arg18: memref<1x32xf32, #tpu.memory_space<vmem>>, %arg19: memref<1x12x32xf32, #tpu.memory_space<vmem>>) attributes {dimension_semantics = [#tpu.dimension_semantics<parallel>], iteration_bounds = array<i64: 2>, scalar_prefetch = 0 : i64, scratch_operands = 0 : i64, tpu.core_type = #tpu.core_type<tc>, window_params = [{transform_indices = @transform_0, window_bounds = array<i64: 1, 8, 1>}, {transform_indices = @transform_1, window_bounds = array<i64: 1, 4, 1>}, {pipeline_mode = #tpu.pipeline_mode<synchronous>, transform_indices = @transform_2, window_bounds = array<i64: 64, 32>}, {pipeline_mode = #tpu.pipeline_mode<synchronous>, transform_indices = @transform_3, window_bounds = array<i64: 16, 32>}, {pipeline_mode = #tpu.pipeline_mode<synchronous>, transform_indices = @transform_4, window_bounds = array<i64: 2, 1, 32>}, {pipeline_mode = #tpu.pipeline_mode<synchronous>, transform_indices = @transform_5, window_bounds = array<i64: 2, 1, 32>}, {pipeline_mode = #tpu.pipeline_mode<synchronous>, transform_indices = @transform_6, window_bounds = array<i64: 2, 32, 96>}, {pipeline_mode = #tpu.pipeline_mode<synchronous>, transform_indices = @transform_7, window_bounds = array<i64: 2, 1, 96>}, {pipeline_mode = #tpu.pipeline_mode<synchronous>, transform_indices = @transform_8, window_bounds = array<i64: 2, 32, 32>}, {pipeline_mode = #tpu.pipeline_mode<synchronous>, transform_indices = @transform_9, window_bounds = array<i64: 2, 1, 32>}, {pipeline_mode = #tpu.pipeline_mode<synchronous>, transform_indices = @transform_10, window_bounds = array<i64: 2, 1, 32>}, {pipeline_mode = #tpu.pipeline_mode<synchronous>, transform_indices = @transform_11, window_bounds = array<i64: 2, 1, 32>}, {pipeline_mode = #tpu.pipeline_mode<synchronous>, transform_indices = @transform_12, window_bounds = array<i64: 2, 32, 128>}, {pipeline_mode = #tpu.pipeline_mode<synchronous>, transform_indices = @transform_13, window_bounds = array<i64: 2, 1, 128>}, {pipeline_mode = #tpu.pipeline_mode<synchronous>, transform_indices = @transform_14, window_bounds = array<i64: 2, 128, 32>}, {pipeline_mode = #tpu.pipeline_mode<synchronous>, transform_indices = @transform_15, window_bounds = array<i64: 2, 1, 32>}, {pipeline_mode = #tpu.pipeline_mode<synchronous>, transform_indices = @transform_16, window_bounds = array<i64: 1, 32>}, {pipeline_mode = #tpu.pipeline_mode<synchronous>, transform_indices = @transform_17, window_bounds = array<i64: 1, 32>}, {transform_indices = @transform_18, window_bounds = array<i64: 1, 12, 32>}]} {
    %c0 = arith.constant 0 : index
    %c0_0 = arith.constant 0 : index
    %c0_1 = arith.constant 0 : index
    %0 = vector.load %arg1[%c0, %c0_0, %c0_1] : memref<1x8x1xi32, #tpu.memory_space<vmem>>, vector<1x8x1xi32>
    %1 = vector.shape_cast %0 : vector<1x8x1xi32> to vector<8x1xi32>
    %2 = tpu.iota {dimensions = array<i32: 1>} : vector<8x64xi32>
    %3 = vector.broadcast %1 : vector<8x1xi32> to vector<8x64xi32>
    %4 = arith.cmpi eq, %3, %2 : vector<8x64xi32>
    %5 = arith.extui %4 : vector<8x64xi1> to vector<8x64xi32>
    %6 = arith.sitofp %5 : vector<8x64xi32> to vector<8x64xf32>
    %c0_2 = arith.constant 0 : index
    %c0_3 = arith.constant 0 : index
    %7 = vector.load %arg3[%c0_2, %c0_3] : memref<64x32xf32, #tpu.memory_space<vmem>>, vector<64x32xf32>
    %cst = arith.constant dense<0.000000e+00> : vector<8x32xf32>
    %8 = tpu.matmul %6, %7, %cst {dimension_numbers = #tpu.dot_dimension_numbers<[1], [0], [0], [1], [0, 0, 1, 1], [], []>} : vector<8x64xf32>, vector<64x32xf32>, vector<8x32xf32> -> vector<8x32xf32>
    %c0_4 = arith.constant 0 : index
    %c0_5 = arith.constant 0 : index
    %9 = vector.load %arg4[%c0_4, %c0_5] : memref<16x32xf32, #tpu.memory_space<vmem>>, vector<8x32xf32>
    %10 = arith.addf %8, %9 : vector<8x32xf32>
    %c0_6 = arith.constant 0 : index
    %c0_7 = arith.constant 0 : index
    %c0_8 = arith.constant 0 : index
    %11 = vector.load %arg2[%c0_6, %c0_7, %c0_8] : memref<1x4x1xf32, #tpu.memory_space<vmem>>, vector<1x4x1xf32>
    %12 = vector.shape_cast %11 : vector<1x4x1xf32> to vector<4x1xf32>
    %13 = vector.shape_cast %12 : vector<4x1xf32> to vector<4x1xf32>
    %14 = vector.broadcast %13 : vector<4x1xf32> to vector<4x32xf32>
    %15 = tpu.concatenate %10, %14 in 0 : vector<8x32xf32>, vector<4x32xf32> -> vector<12x32xf32>
    %c0_9 = arith.constant 0 : index
    %c0_10 = arith.constant 0 : index
    %c0_11 = arith.constant 0 : index
    %16 = vector.load %arg5[%c0_9, %c0_10, %c0_11] : memref<2x1x32xf32, #tpu.memory_space<vmem>>, vector<1x1x32xf32>
    %17 = vector.shape_cast %16 : vector<1x1x32xf32> to vector<1x32xf32>
    %c0_12 = arith.constant 0 : index
    %c0_13 = arith.constant 0 : index
    %c0_14 = arith.constant 0 : index
    %18 = vector.load %arg6[%c0_12, %c0_13, %c0_14] : memref<2x1x32xf32, #tpu.memory_space<vmem>>, vector<1x1x32xf32>
    %19 = vector.shape_cast %18 : vector<1x1x32xf32> to vector<1x32xf32>
    %cst_15 = arith.constant dense<0.000000e+00> : vector<12xf32>
    %20 = vector.multi_reduction <add>, %15, %cst_15 [1] : vector<12x32xf32> to vector<12xf32>
    %21 = vector.shape_cast %20 : vector<12xf32> to vector<12x1xf32>
    %cst_16 = arith.constant 3.200000e+01 : f32
    %22 = vector.broadcast %cst_16 : f32 to vector<12x1xf32>
    %23 = arith.divf %21, %22 : vector<12x1xf32>
    %24 = vector.broadcast %23 : vector<12x1xf32> to vector<12x32xf32>
    %25 = arith.subf %15, %24 : vector<12x32xf32>
    %26 = arith.mulf %25, %25 : vector<12x32xf32>
    %cst_17 = arith.constant dense<0.000000e+00> : vector<12xf32>
    %27 = vector.multi_reduction <add>, %26, %cst_17 [1] : vector<12x32xf32> to vector<12xf32>
    %28 = vector.shape_cast %27 : vector<12xf32> to vector<12x1xf32>
    %cst_18 = arith.constant 3.200000e+01 : f32
    %29 = vector.broadcast %cst_18 : f32 to vector<12x1xf32>
    %30 = arith.divf %28, %29 : vector<12x1xf32>
    %31 = vector.broadcast %23 : vector<12x1xf32> to vector<12x32xf32>
    %32 = arith.subf %15, %31 : vector<12x32xf32>
    %cst_19 = arith.constant 9.99999974E-6 : f32
    %33 = vector.broadcast %cst_19 : f32 to vector<12x1xf32>
    %34 = arith.addf %30, %33 : vector<12x1xf32>
    %35 = math.rsqrt %34 : vector<12x1xf32>
    %36 = vector.broadcast %35 : vector<12x1xf32> to vector<12x32xf32>
    %37 = arith.mulf %32, %36 : vector<12x32xf32>
    %38 = vector.broadcast %17 : vector<1x32xf32> to vector<12x32xf32>
    %39 = arith.mulf %37, %38 : vector<12x32xf32>
    %40 = vector.broadcast %19 : vector<1x32xf32> to vector<12x32xf32>
    %41 = arith.addf %39, %40 : vector<12x32xf32>
    %42 = arith.truncf %41 : vector<12x32xf32> to vector<12x32xbf16>
    %c0_20 = arith.constant 0 : index
    %c0_21 = arith.constant 0 : index
    %c0_22 = arith.constant 0 : index
    %43 = vector.load %arg7[%c0_20, %c0_21, %c0_22] : memref<2x32x96xbf16, #tpu.memory_space<vmem>>, vector<1x32x96xbf16>
    %44 = vector.shape_cast %43 : vector<1x32x96xbf16> to vector<32x96xbf16>
    %cst_23 = arith.constant dense<0.000000e+00> : vector<12x96xf32>
    %45 = tpu.matmul %42, %44, %cst_23 {dimension_numbers = #tpu.dot_dimension_numbers<[1], [0], [0], [1], [0, 0, 1, 1], [], []>} : vector<12x32xbf16>, vector<32x96xbf16>, vector<12x96xf32> -> vector<12x96xf32>
    %c0_24 = arith.constant 0 : index
    %c0_25 = arith.constant 0 : index
    %c0_26 = arith.constant 0 : index
    %46 = vector.load %arg8[%c0_24, %c0_25, %c0_26] : memref<2x1x96xf32, #tpu.memory_space<vmem>>, vector<1x1x96xf32>
    %47 = vector.shape_cast %46 : vector<1x1x96xf32> to vector<1x96xf32>
    %48 = vector.broadcast %47 : vector<1x96xf32> to vector<12x96xf32>
    %49 = arith.addf %45, %48 : vector<12x96xf32>
    %50 = vector.extract_strided_slice %49 {offsets = [0, 0], sizes = [12, 8], strides = [1, 1]} : vector<12x96xf32> to vector<12x8xf32>
    %51 = arith.truncf %50 : vector<12x8xf32> to vector<12x8xbf16>
    %52 = vector.extract_strided_slice %49 {offsets = [0, 32], sizes = [12, 8], strides = [1, 1]} : vector<12x96xf32> to vector<12x8xf32>
    %53 = arith.truncf %52 : vector<12x8xf32> to vector<12x8xbf16>
    %54 = vector.extract_strided_slice %49 {offsets = [0, 64], sizes = [12, 8], strides = [1, 1]} : vector<12x96xf32> to vector<12x8xf32>
    %55 = arith.truncf %54 : vector<12x8xf32> to vector<12x8xbf16>
    %cst_27 = arith.constant dense<0.000000e+00> : vector<12x12xf32>
    %56 = tpu.matmul %51, %53, %cst_27 {dimension_numbers = #tpu.dot_dimension_numbers<[1], [1], [0], [0], [0, 0, 1, 0], [], []>} : vector<12x8xbf16>, vector<12x8xbf16>, vector<12x12xf32> -> vector<12x12xf32>
    %cst_28 = arith.constant dense<0xFF800000> : vector<12xf32>
    %57 = vector.multi_reduction <maximumf>, %56, %cst_28 [1] : vector<12x12xf32> to vector<12xf32>
    %58 = vector.shape_cast %57 : vector<12xf32> to vector<12x1xf32>
    %59 = vector.broadcast %58 : vector<12x1xf32> to vector<12x12xf32>
    %60 = arith.subf %56, %59 : vector<12x12xf32>
    %61 = math.exp %60 : vector<12x12xf32>
    %cst_29 = arith.constant dense<0.000000e+00> : vector<12xf32>
    %62 = vector.multi_reduction <add>, %61, %cst_29 [1] : vector<12x12xf32> to vector<12xf32>
    %63 = vector.shape_cast %62 : vector<12xf32> to vector<12x1xf32>
    %64 = tpu.reciprocal %63 {approx = true} : vector<12x1xf32> -> vector<12x1xf32>
    %65 = vector.broadcast %64 : vector<12x1xf32> to vector<12x12xf32>
    %66 = arith.mulf %61, %65 : vector<12x12xf32>
    %67 = arith.truncf %66 : vector<12x12xf32> to vector<12x12xbf16>
    %cst_30 = arith.constant dense<0.000000e+00> : vector<12x8xf32>
    %68 = tpu.matmul %67, %55, %cst_30 {dimension_numbers = #tpu.dot_dimension_numbers<[1], [0], [0], [1], [0, 0, 1, 1], [], []>} : vector<12x12xbf16>, vector<12x8xbf16>, vector<12x8xf32> -> vector<12x8xf32>
    %69 = vector.extract_strided_slice %49 {offsets = [0, 8], sizes = [12, 8], strides = [1, 1]} : vector<12x96xf32> to vector<12x8xf32>
    %70 = arith.truncf %69 : vector<12x8xf32> to vector<12x8xbf16>
    %71 = vector.extract_strided_slice %49 {offsets = [0, 40], sizes = [12, 8], strides = [1, 1]} : vector<12x96xf32> to vector<12x8xf32>
    %72 = arith.truncf %71 : vector<12x8xf32> to vector<12x8xbf16>
    %73 = vector.extract_strided_slice %49 {offsets = [0, 72], sizes = [12, 8], strides = [1, 1]} : vector<12x96xf32> to vector<12x8xf32>
    %74 = arith.truncf %73 : vector<12x8xf32> to vector<12x8xbf16>
    %cst_31 = arith.constant dense<0.000000e+00> : vector<12x12xf32>
    %75 = tpu.matmul %70, %72, %cst_31 {dimension_numbers = #tpu.dot_dimension_numbers<[1], [1], [0], [0], [0, 0, 1, 0], [], []>} : vector<12x8xbf16>, vector<12x8xbf16>, vector<12x12xf32> -> vector<12x12xf32>
    %cst_32 = arith.constant dense<0xFF800000> : vector<12xf32>
    %76 = vector.multi_reduction <maximumf>, %75, %cst_32 [1] : vector<12x12xf32> to vector<12xf32>
    %77 = vector.shape_cast %76 : vector<12xf32> to vector<12x1xf32>
    %78 = vector.broadcast %77 : vector<12x1xf32> to vector<12x12xf32>
    %79 = arith.subf %75, %78 : vector<12x12xf32>
    %80 = math.exp %79 : vector<12x12xf32>
    %cst_33 = arith.constant dense<0.000000e+00> : vector<12xf32>
    %81 = vector.multi_reduction <add>, %80, %cst_33 [1] : vector<12x12xf32> to vector<12xf32>
    %82 = vector.shape_cast %81 : vector<12xf32> to vector<12x1xf32>
    %83 = tpu.reciprocal %82 {approx = true} : vector<12x1xf32> -> vector<12x1xf32>
    %84 = vector.broadcast %83 : vector<12x1xf32> to vector<12x12xf32>
    %85 = arith.mulf %80, %84 : vector<12x12xf32>
    %86 = arith.truncf %85 : vector<12x12xf32> to vector<12x12xbf16>
    %cst_34 = arith.constant dense<0.000000e+00> : vector<12x8xf32>
    %87 = tpu.matmul %86, %74, %cst_34 {dimension_numbers = #tpu.dot_dimension_numbers<[1], [0], [0], [1], [0, 0, 1, 1], [], []>} : vector<12x12xbf16>, vector<12x8xbf16>, vector<12x8xf32> -> vector<12x8xf32>
    %88 = vector.extract_strided_slice %49 {offsets = [0, 16], sizes = [12, 8], strides = [1, 1]} : vector<12x96xf32> to vector<12x8xf32>
    %89 = arith.truncf %88 : vector<12x8xf32> to vector<12x8xbf16>
    %90 = vector.extract_strided_slice %49 {offsets = [0, 48], sizes = [12, 8], strides = [1, 1]} : vector<12x96xf32> to vector<12x8xf32>
    %91 = arith.truncf %90 : vector<12x8xf32> to vector<12x8xbf16>
    %92 = vector.extract_strided_slice %49 {offsets = [0, 80], sizes = [12, 8], strides = [1, 1]} : vector<12x96xf32> to vector<12x8xf32>
    %93 = arith.truncf %92 : vector<12x8xf32> to vector<12x8xbf16>
    %cst_35 = arith.constant dense<0.000000e+00> : vector<12x12xf32>
    %94 = tpu.matmul %89, %91, %cst_35 {dimension_numbers = #tpu.dot_dimension_numbers<[1], [1], [0], [0], [0, 0, 1, 0], [], []>} : vector<12x8xbf16>, vector<12x8xbf16>, vector<12x12xf32> -> vector<12x12xf32>
    %cst_36 = arith.constant dense<0xFF800000> : vector<12xf32>
    %95 = vector.multi_reduction <maximumf>, %94, %cst_36 [1] : vector<12x12xf32> to vector<12xf32>
    %96 = vector.shape_cast %95 : vector<12xf32> to vector<12x1xf32>
    %97 = vector.broadcast %96 : vector<12x1xf32> to vector<12x12xf32>
    %98 = arith.subf %94, %97 : vector<12x12xf32>
    %99 = math.exp %98 : vector<12x12xf32>
    %cst_37 = arith.constant dense<0.000000e+00> : vector<12xf32>
    %100 = vector.multi_reduction <add>, %99, %cst_37 [1] : vector<12x12xf32> to vector<12xf32>
    %101 = vector.shape_cast %100 : vector<12xf32> to vector<12x1xf32>
    %102 = tpu.reciprocal %101 {approx = true} : vector<12x1xf32> -> vector<12x1xf32>
    %103 = vector.broadcast %102 : vector<12x1xf32> to vector<12x12xf32>
    %104 = arith.mulf %99, %103 : vector<12x12xf32>
    %105 = arith.truncf %104 : vector<12x12xf32> to vector<12x12xbf16>
    %cst_38 = arith.constant dense<0.000000e+00> : vector<12x8xf32>
    %106 = tpu.matmul %105, %93, %cst_38 {dimension_numbers = #tpu.dot_dimension_numbers<[1], [0], [0], [1], [0, 0, 1, 1], [], []>} : vector<12x12xbf16>, vector<12x8xbf16>, vector<12x8xf32> -> vector<12x8xf32>
    %107 = vector.extract_strided_slice %49 {offsets = [0, 24], sizes = [12, 8], strides = [1, 1]} : vector<12x96xf32> to vector<12x8xf32>
    %108 = arith.truncf %107 : vector<12x8xf32> to vector<12x8xbf16>
    %109 = vector.extract_strided_slice %49 {offsets = [0, 56], sizes = [12, 8], strides = [1, 1]} : vector<12x96xf32> to vector<12x8xf32>
    %110 = arith.truncf %109 : vector<12x8xf32> to vector<12x8xbf16>
    %111 = vector.extract_strided_slice %49 {offsets = [0, 88], sizes = [12, 8], strides = [1, 1]} : vector<12x96xf32> to vector<12x8xf32>
    %112 = arith.truncf %111 : vector<12x8xf32> to vector<12x8xbf16>
    %cst_39 = arith.constant dense<0.000000e+00> : vector<12x12xf32>
    %113 = tpu.matmul %108, %110, %cst_39 {dimension_numbers = #tpu.dot_dimension_numbers<[1], [1], [0], [0], [0, 0, 1, 0], [], []>} : vector<12x8xbf16>, vector<12x8xbf16>, vector<12x12xf32> -> vector<12x12xf32>
    %cst_40 = arith.constant dense<0xFF800000> : vector<12xf32>
    %114 = vector.multi_reduction <maximumf>, %113, %cst_40 [1] : vector<12x12xf32> to vector<12xf32>
    %115 = vector.shape_cast %114 : vector<12xf32> to vector<12x1xf32>
    %116 = vector.broadcast %115 : vector<12x1xf32> to vector<12x12xf32>
    %117 = arith.subf %113, %116 : vector<12x12xf32>
    %118 = math.exp %117 : vector<12x12xf32>
    %cst_41 = arith.constant dense<0.000000e+00> : vector<12xf32>
    %119 = vector.multi_reduction <add>, %118, %cst_41 [1] : vector<12x12xf32> to vector<12xf32>
    %120 = vector.shape_cast %119 : vector<12xf32> to vector<12x1xf32>
    %121 = tpu.reciprocal %120 {approx = true} : vector<12x1xf32> -> vector<12x1xf32>
    %122 = vector.broadcast %121 : vector<12x1xf32> to vector<12x12xf32>
    %123 = arith.mulf %118, %122 : vector<12x12xf32>
    %124 = arith.truncf %123 : vector<12x12xf32> to vector<12x12xbf16>
    %cst_42 = arith.constant dense<0.000000e+00> : vector<12x8xf32>
    %125 = tpu.matmul %124, %112, %cst_42 {dimension_numbers = #tpu.dot_dimension_numbers<[1], [0], [0], [1], [0, 0, 1, 1], [], []>} : vector<12x12xbf16>, vector<12x8xbf16>, vector<12x8xf32> -> vector<12x8xf32>
    %126 = tpu.concatenate %68, %87, %106, %125 in 1 : vector<12x8xf32>, vector<12x8xf32>, vector<12x8xf32>, vector<12x8xf32> -> vector<12x32xf32>
    %127 = arith.truncf %126 : vector<12x32xf32> to vector<12x32xbf16>
    %c0_43 = arith.constant 0 : index
    %c0_44 = arith.constant 0 : index
    %c0_45 = arith.constant 0 : index
    %128 = vector.load %arg9[%c0_43, %c0_44, %c0_45] : memref<2x32x32xbf16, #tpu.memory_space<vmem>>, vector<1x32x32xbf16>
    %129 = vector.shape_cast %128 : vector<1x32x32xbf16> to vector<32x32xbf16>
    %cst_46 = arith.constant dense<0.000000e+00> : vector<12x32xf32>
    %130 = tpu.matmul %127, %129, %cst_46 {dimension_numbers = #tpu.dot_dimension_numbers<[1], [0], [0], [1], [0, 0, 1, 1], [], []>} : vector<12x32xbf16>, vector<32x32xbf16>, vector<12x32xf32> -> vector<12x32xf32>
    %c0_47 = arith.constant 0 : index
    %c0_48 = arith.constant 0 : index
    %c0_49 = arith.constant 0 : index
    %131 = vector.load %arg10[%c0_47, %c0_48, %c0_49] : memref<2x1x32xf32, #tpu.memory_space<vmem>>, vector<1x1x32xf32>
    %132 = vector.shape_cast %131 : vector<1x1x32xf32> to vector<1x32xf32>
    %133 = vector.broadcast %132 : vector<1x32xf32> to vector<12x32xf32>
    %134 = arith.addf %130, %133 : vector<12x32xf32>
    %135 = arith.addf %15, %134 : vector<12x32xf32>
    %c0_50 = arith.constant 0 : index
    %c0_51 = arith.constant 0 : index
    %c0_52 = arith.constant 0 : index
    %136 = vector.load %arg11[%c0_50, %c0_51, %c0_52] : memref<2x1x32xf32, #tpu.memory_space<vmem>>, vector<1x1x32xf32>
    %137 = vector.shape_cast %136 : vector<1x1x32xf32> to vector<1x32xf32>
    %c0_53 = arith.constant 0 : index
    %c0_54 = arith.constant 0 : index
    %c0_55 = arith.constant 0 : index
    %138 = vector.load %arg12[%c0_53, %c0_54, %c0_55] : memref<2x1x32xf32, #tpu.memory_space<vmem>>, vector<1x1x32xf32>
    %139 = vector.shape_cast %138 : vector<1x1x32xf32> to vector<1x32xf32>
    %cst_56 = arith.constant dense<0.000000e+00> : vector<12xf32>
    %140 = vector.multi_reduction <add>, %135, %cst_56 [1] : vector<12x32xf32> to vector<12xf32>
    %141 = vector.shape_cast %140 : vector<12xf32> to vector<12x1xf32>
    %cst_57 = arith.constant 3.200000e+01 : f32
    %142 = vector.broadcast %cst_57 : f32 to vector<12x1xf32>
    %143 = arith.divf %141, %142 : vector<12x1xf32>
    %144 = vector.broadcast %143 : vector<12x1xf32> to vector<12x32xf32>
    %145 = arith.subf %135, %144 : vector<12x32xf32>
    %146 = arith.mulf %145, %145 : vector<12x32xf32>
    %cst_58 = arith.constant dense<0.000000e+00> : vector<12xf32>
    %147 = vector.multi_reduction <add>, %146, %cst_58 [1] : vector<12x32xf32> to vector<12xf32>
    %148 = vector.shape_cast %147 : vector<12xf32> to vector<12x1xf32>
    %cst_59 = arith.constant 3.200000e+01 : f32
    %149 = vector.broadcast %cst_59 : f32 to vector<12x1xf32>
    %150 = arith.divf %148, %149 : vector<12x1xf32>
    %151 = vector.broadcast %143 : vector<12x1xf32> to vector<12x32xf32>
    %152 = arith.subf %135, %151 : vector<12x32xf32>
    %cst_60 = arith.constant 9.99999974E-6 : f32
    %153 = vector.broadcast %cst_60 : f32 to vector<12x1xf32>
    %154 = arith.addf %150, %153 : vector<12x1xf32>
    %155 = math.rsqrt %154 : vector<12x1xf32>
    %156 = vector.broadcast %155 : vector<12x1xf32> to vector<12x32xf32>
    %157 = arith.mulf %152, %156 : vector<12x32xf32>
    %158 = vector.broadcast %137 : vector<1x32xf32> to vector<12x32xf32>
    %159 = arith.mulf %157, %158 : vector<12x32xf32>
    %160 = vector.broadcast %139 : vector<1x32xf32> to vector<12x32xf32>
    %161 = arith.addf %159, %160 : vector<12x32xf32>
    %162 = arith.truncf %161 : vector<12x32xf32> to vector<12x32xbf16>
    %c0_61 = arith.constant 0 : index
    %c0_62 = arith.constant 0 : index
    %c0_63 = arith.constant 0 : index
    %163 = vector.load %arg13[%c0_61, %c0_62, %c0_63] : memref<2x32x128xbf16, #tpu.memory_space<vmem>>, vector<1x32x128xbf16>
    %164 = vector.shape_cast %163 : vector<1x32x128xbf16> to vector<32x128xbf16>
    %cst_64 = arith.constant dense<0.000000e+00> : vector<12x128xf32>
    %165 = tpu.matmul %162, %164, %cst_64 {dimension_numbers = #tpu.dot_dimension_numbers<[1], [0], [0], [1], [0, 0, 1, 1], [], []>} : vector<12x32xbf16>, vector<32x128xbf16>, vector<12x128xf32> -> vector<12x128xf32>
    %c0_65 = arith.constant 0 : index
    %c0_66 = arith.constant 0 : index
    %c0_67 = arith.constant 0 : index
    %166 = vector.load %arg14[%c0_65, %c0_66, %c0_67] : memref<2x1x128xf32, #tpu.memory_space<vmem>>, vector<1x1x128xf32>
    %167 = vector.shape_cast %166 : vector<1x1x128xf32> to vector<1x128xf32>
    %168 = vector.broadcast %167 : vector<1x128xf32> to vector<12x128xf32>
    %169 = arith.addf %165, %168 : vector<12x128xf32>
    %cst_68 = arith.constant 5.000000e-01 : f32
    %170 = vector.broadcast %cst_68 : f32 to vector<12x128xf32>
    %171 = arith.mulf %170, %169 : vector<12x128xf32>
    %cst_69 = arith.constant 0.707106769 : f32
    %172 = vector.broadcast %cst_69 : f32 to vector<12x128xf32>
    %173 = arith.mulf %169, %172 : vector<12x128xf32>
    %174 = math.absf %173 : vector<12x128xf32>
    %cst_70 = arith.constant 0.327591091 : f32
    %175 = vector.broadcast %cst_70 : f32 to vector<12x128xf32>
    %176 = arith.mulf %175, %174 : vector<12x128xf32>
    %cst_71 = arith.constant 1.000000e+00 : f32
    %177 = vector.broadcast %cst_71 : f32 to vector<12x128xf32>
    %178 = arith.addf %177, %176 : vector<12x128xf32>
    %cst_72 = arith.constant 1.000000e+00 : f32
    %179 = vector.broadcast %cst_72 : f32 to vector<12x128xf32>
    %180 = arith.divf %179, %178 : vector<12x128xf32>
    %cst_73 = arith.constant 1.06140542 : f32
    %181 = vector.broadcast %cst_73 : f32 to vector<12x128xf32>
    %182 = arith.mulf %181, %180 : vector<12x128xf32>
    %cst_74 = arith.constant -1.45315206 : f32
    %183 = vector.broadcast %cst_74 : f32 to vector<12x128xf32>
    %184 = arith.addf %182, %183 : vector<12x128xf32>
    %185 = arith.mulf %184, %180 : vector<12x128xf32>
    %cst_75 = arith.constant 1.42141378 : f32
    %186 = vector.broadcast %cst_75 : f32 to vector<12x128xf32>
    %187 = arith.addf %185, %186 : vector<12x128xf32>
    %188 = arith.mulf %187, %180 : vector<12x128xf32>
    %cst_76 = arith.constant -0.284496725 : f32
    %189 = vector.broadcast %cst_76 : f32 to vector<12x128xf32>
    %190 = arith.addf %188, %189 : vector<12x128xf32>
    %191 = arith.mulf %190, %180 : vector<12x128xf32>
    %cst_77 = arith.constant 0.254829586 : f32
    %192 = vector.broadcast %cst_77 : f32 to vector<12x128xf32>
    %193 = arith.addf %191, %192 : vector<12x128xf32>
    %194 = arith.mulf %193, %180 : vector<12x128xf32>
    %cst_78 = arith.constant 0.000000e+00 : f32
    %195 = vector.broadcast %cst_78 : f32 to vector<12x128xf32>
    %196 = arith.subf %195, %174 : vector<12x128xf32>
    %197 = arith.mulf %196, %174 : vector<12x128xf32>
    %198 = math.exp %197 : vector<12x128xf32>
    %199 = arith.mulf %194, %198 : vector<12x128xf32>
    %cst_79 = arith.constant 1.000000e+00 : f32
    %200 = vector.broadcast %cst_79 : f32 to vector<12x128xf32>
    %201 = arith.subf %200, %199 : vector<12x128xf32>
    %cst_80 = arith.constant 0.000000e+00 : f32
    %202 = vector.broadcast %cst_80 : f32 to vector<12x128xf32>
    %203 = arith.cmpf oge, %173, %202 : vector<12x128xf32>
    %cst_81 = arith.constant 0.000000e+00 : f32
    %204 = vector.broadcast %cst_81 : f32 to vector<12x128xf32>
    %205 = arith.subf %204, %201 : vector<12x128xf32>
    %206 = arith.select %203, %201, %205 : vector<12x128xi1>, vector<12x128xf32>
    %cst_82 = arith.constant 1.000000e+00 : f32
    %207 = vector.broadcast %cst_82 : f32 to vector<12x128xf32>
    %208 = arith.addf %207, %206 : vector<12x128xf32>
    %209 = arith.mulf %171, %208 : vector<12x128xf32>
    %210 = arith.truncf %209 : vector<12x128xf32> to vector<12x128xbf16>
    %c0_83 = arith.constant 0 : index
    %c0_84 = arith.constant 0 : index
    %c0_85 = arith.constant 0 : index
    %211 = vector.load %arg15[%c0_83, %c0_84, %c0_85] : memref<2x128x32xbf16, #tpu.memory_space<vmem>>, vector<1x128x32xbf16>
    %212 = vector.shape_cast %211 : vector<1x128x32xbf16> to vector<128x32xbf16>
    %cst_86 = arith.constant dense<0.000000e+00> : vector<12x32xf32>
    %213 = tpu.matmul %210, %212, %cst_86 {dimension_numbers = #tpu.dot_dimension_numbers<[1], [0], [0], [1], [0, 0, 1, 1], [], []>} : vector<12x128xbf16>, vector<128x32xbf16>, vector<12x32xf32> -> vector<12x32xf32>
    %c0_87 = arith.constant 0 : index
    %c0_88 = arith.constant 0 : index
    %c0_89 = arith.constant 0 : index
    %214 = vector.load %arg16[%c0_87, %c0_88, %c0_89] : memref<2x1x32xf32, #tpu.memory_space<vmem>>, vector<1x1x32xf32>
    %215 = vector.shape_cast %214 : vector<1x1x32xf32> to vector<1x32xf32>
    %216 = vector.broadcast %215 : vector<1x32xf32> to vector<12x32xf32>
    %217 = arith.addf %213, %216 : vector<12x32xf32>
    %218 = arith.addf %135, %217 : vector<12x32xf32>
    %c1 = arith.constant 1 : index
    %c0_90 = arith.constant 0 : index
    %c0_91 = arith.constant 0 : index
    %219 = vector.load %arg5[%c1, %c0_90, %c0_91] : memref<2x1x32xf32, #tpu.memory_space<vmem>>, vector<1x1x32xf32>
    %220 = vector.shape_cast %219 : vector<1x1x32xf32> to vector<1x32xf32>
    %c1_92 = arith.constant 1 : index
    %c0_93 = arith.constant 0 : index
    %c0_94 = arith.constant 0 : index
    %221 = vector.load %arg6[%c1_92, %c0_93, %c0_94] : memref<2x1x32xf32, #tpu.memory_space<vmem>>, vector<1x1x32xf32>
    %222 = vector.shape_cast %221 : vector<1x1x32xf32> to vector<1x32xf32>
    %cst_95 = arith.constant dense<0.000000e+00> : vector<12xf32>
    %223 = vector.multi_reduction <add>, %218, %cst_95 [1] : vector<12x32xf32> to vector<12xf32>
    %224 = vector.shape_cast %223 : vector<12xf32> to vector<12x1xf32>
    %cst_96 = arith.constant 3.200000e+01 : f32
    %225 = vector.broadcast %cst_96 : f32 to vector<12x1xf32>
    %226 = arith.divf %224, %225 : vector<12x1xf32>
    %227 = vector.broadcast %226 : vector<12x1xf32> to vector<12x32xf32>
    %228 = arith.subf %218, %227 : vector<12x32xf32>
    %229 = arith.mulf %228, %228 : vector<12x32xf32>
    %cst_97 = arith.constant dense<0.000000e+00> : vector<12xf32>
    %230 = vector.multi_reduction <add>, %229, %cst_97 [1] : vector<12x32xf32> to vector<12xf32>
    %231 = vector.shape_cast %230 : vector<12xf32> to vector<12x1xf32>
    %cst_98 = arith.constant 3.200000e+01 : f32
    %232 = vector.broadcast %cst_98 : f32 to vector<12x1xf32>
    %233 = arith.divf %231, %232 : vector<12x1xf32>
    %234 = vector.broadcast %226 : vector<12x1xf32> to vector<12x32xf32>
    %235 = arith.subf %218, %234 : vector<12x32xf32>
    %cst_99 = arith.constant 9.99999974E-6 : f32
    %236 = vector.broadcast %cst_99 : f32 to vector<12x1xf32>
    %237 = arith.addf %233, %236 : vector<12x1xf32>
    %238 = math.rsqrt %237 : vector<12x1xf32>
    %239 = vector.broadcast %238 : vector<12x1xf32> to vector<12x32xf32>
    %240 = arith.mulf %235, %239 : vector<12x32xf32>
    %241 = vector.broadcast %220 : vector<1x32xf32> to vector<12x32xf32>
    %242 = arith.mulf %240, %241 : vector<12x32xf32>
    %243 = vector.broadcast %222 : vector<1x32xf32> to vector<12x32xf32>
    %244 = arith.addf %242, %243 : vector<12x32xf32>
    %245 = arith.truncf %244 : vector<12x32xf32> to vector<12x32xbf16>
    %c1_100 = arith.constant 1 : index
    %c0_101 = arith.constant 0 : index
    %c0_102 = arith.constant 0 : index
    %246 = vector.load %arg7[%c1_100, %c0_101, %c0_102] : memref<2x32x96xbf16, #tpu.memory_space<vmem>>, vector<1x32x96xbf16>
    %247 = vector.shape_cast %246 : vector<1x32x96xbf16> to vector<32x96xbf16>
    %cst_103 = arith.constant dense<0.000000e+00> : vector<12x96xf32>
    %248 = tpu.matmul %245, %247, %cst_103 {dimension_numbers = #tpu.dot_dimension_numbers<[1], [0], [0], [1], [0, 0, 1, 1], [], []>} : vector<12x32xbf16>, vector<32x96xbf16>, vector<12x96xf32> -> vector<12x96xf32>
    %c1_104 = arith.constant 1 : index
    %c0_105 = arith.constant 0 : index
    %c0_106 = arith.constant 0 : index
    %249 = vector.load %arg8[%c1_104, %c0_105, %c0_106] : memref<2x1x96xf32, #tpu.memory_space<vmem>>, vector<1x1x96xf32>
    %250 = vector.shape_cast %249 : vector<1x1x96xf32> to vector<1x96xf32>
    %251 = vector.broadcast %250 : vector<1x96xf32> to vector<12x96xf32>
    %252 = arith.addf %248, %251 : vector<12x96xf32>
    %253 = vector.extract_strided_slice %252 {offsets = [0, 0], sizes = [12, 8], strides = [1, 1]} : vector<12x96xf32> to vector<12x8xf32>
    %254 = arith.truncf %253 : vector<12x8xf32> to vector<12x8xbf16>
    %255 = vector.extract_strided_slice %252 {offsets = [0, 32], sizes = [12, 8], strides = [1, 1]} : vector<12x96xf32> to vector<12x8xf32>
    %256 = arith.truncf %255 : vector<12x8xf32> to vector<12x8xbf16>
    %257 = vector.extract_strided_slice %252 {offsets = [0, 64], sizes = [12, 8], strides = [1, 1]} : vector<12x96xf32> to vector<12x8xf32>
    %258 = arith.truncf %257 : vector<12x8xf32> to vector<12x8xbf16>
    %cst_107 = arith.constant dense<0.000000e+00> : vector<12x12xf32>
    %259 = tpu.matmul %254, %256, %cst_107 {dimension_numbers = #tpu.dot_dimension_numbers<[1], [1], [0], [0], [0, 0, 1, 0], [], []>} : vector<12x8xbf16>, vector<12x8xbf16>, vector<12x12xf32> -> vector<12x12xf32>
    %cst_108 = arith.constant dense<0xFF800000> : vector<12xf32>
    %260 = vector.multi_reduction <maximumf>, %259, %cst_108 [1] : vector<12x12xf32> to vector<12xf32>
    %261 = vector.shape_cast %260 : vector<12xf32> to vector<12x1xf32>
    %262 = vector.broadcast %261 : vector<12x1xf32> to vector<12x12xf32>
    %263 = arith.subf %259, %262 : vector<12x12xf32>
    %264 = math.exp %263 : vector<12x12xf32>
    %cst_109 = arith.constant dense<0.000000e+00> : vector<12xf32>
    %265 = vector.multi_reduction <add>, %264, %cst_109 [1] : vector<12x12xf32> to vector<12xf32>
    %266 = vector.shape_cast %265 : vector<12xf32> to vector<12x1xf32>
    %267 = tpu.reciprocal %266 {approx = true} : vector<12x1xf32> -> vector<12x1xf32>
    %268 = vector.broadcast %267 : vector<12x1xf32> to vector<12x12xf32>
    %269 = arith.mulf %264, %268 : vector<12x12xf32>
    %270 = arith.truncf %269 : vector<12x12xf32> to vector<12x12xbf16>
    %cst_110 = arith.constant dense<0.000000e+00> : vector<12x8xf32>
    %271 = tpu.matmul %270, %258, %cst_110 {dimension_numbers = #tpu.dot_dimension_numbers<[1], [0], [0], [1], [0, 0, 1, 1], [], []>} : vector<12x12xbf16>, vector<12x8xbf16>, vector<12x8xf32> -> vector<12x8xf32>
    %272 = vector.extract_strided_slice %252 {offsets = [0, 8], sizes = [12, 8], strides = [1, 1]} : vector<12x96xf32> to vector<12x8xf32>
    %273 = arith.truncf %272 : vector<12x8xf32> to vector<12x8xbf16>
    %274 = vector.extract_strided_slice %252 {offsets = [0, 40], sizes = [12, 8], strides = [1, 1]} : vector<12x96xf32> to vector<12x8xf32>
    %275 = arith.truncf %274 : vector<12x8xf32> to vector<12x8xbf16>
    %276 = vector.extract_strided_slice %252 {offsets = [0, 72], sizes = [12, 8], strides = [1, 1]} : vector<12x96xf32> to vector<12x8xf32>
    %277 = arith.truncf %276 : vector<12x8xf32> to vector<12x8xbf16>
    %cst_111 = arith.constant dense<0.000000e+00> : vector<12x12xf32>
    %278 = tpu.matmul %273, %275, %cst_111 {dimension_numbers = #tpu.dot_dimension_numbers<[1], [1], [0], [0], [0, 0, 1, 0], [], []>} : vector<12x8xbf16>, vector<12x8xbf16>, vector<12x12xf32> -> vector<12x12xf32>
    %cst_112 = arith.constant dense<0xFF800000> : vector<12xf32>
    %279 = vector.multi_reduction <maximumf>, %278, %cst_112 [1] : vector<12x12xf32> to vector<12xf32>
    %280 = vector.shape_cast %279 : vector<12xf32> to vector<12x1xf32>
    %281 = vector.broadcast %280 : vector<12x1xf32> to vector<12x12xf32>
    %282 = arith.subf %278, %281 : vector<12x12xf32>
    %283 = math.exp %282 : vector<12x12xf32>
    %cst_113 = arith.constant dense<0.000000e+00> : vector<12xf32>
    %284 = vector.multi_reduction <add>, %283, %cst_113 [1] : vector<12x12xf32> to vector<12xf32>
    %285 = vector.shape_cast %284 : vector<12xf32> to vector<12x1xf32>
    %286 = tpu.reciprocal %285 {approx = true} : vector<12x1xf32> -> vector<12x1xf32>
    %287 = vector.broadcast %286 : vector<12x1xf32> to vector<12x12xf32>
    %288 = arith.mulf %283, %287 : vector<12x12xf32>
    %289 = arith.truncf %288 : vector<12x12xf32> to vector<12x12xbf16>
    %cst_114 = arith.constant dense<0.000000e+00> : vector<12x8xf32>
    %290 = tpu.matmul %289, %277, %cst_114 {dimension_numbers = #tpu.dot_dimension_numbers<[1], [0], [0], [1], [0, 0, 1, 1], [], []>} : vector<12x12xbf16>, vector<12x8xbf16>, vector<12x8xf32> -> vector<12x8xf32>
    %291 = vector.extract_strided_slice %252 {offsets = [0, 16], sizes = [12, 8], strides = [1, 1]} : vector<12x96xf32> to vector<12x8xf32>
    %292 = arith.truncf %291 : vector<12x8xf32> to vector<12x8xbf16>
    %293 = vector.extract_strided_slice %252 {offsets = [0, 48], sizes = [12, 8], strides = [1, 1]} : vector<12x96xf32> to vector<12x8xf32>
    %294 = arith.truncf %293 : vector<12x8xf32> to vector<12x8xbf16>
    %295 = vector.extract_strided_slice %252 {offsets = [0, 80], sizes = [12, 8], strides = [1, 1]} : vector<12x96xf32> to vector<12x8xf32>
    %296 = arith.truncf %295 : vector<12x8xf32> to vector<12x8xbf16>
    %cst_115 = arith.constant dense<0.000000e+00> : vector<12x12xf32>
    %297 = tpu.matmul %292, %294, %cst_115 {dimension_numbers = #tpu.dot_dimension_numbers<[1], [1], [0], [0], [0, 0, 1, 0], [], []>} : vector<12x8xbf16>, vector<12x8xbf16>, vector<12x12xf32> -> vector<12x12xf32>
    %cst_116 = arith.constant dense<0xFF800000> : vector<12xf32>
    %298 = vector.multi_reduction <maximumf>, %297, %cst_116 [1] : vector<12x12xf32> to vector<12xf32>
    %299 = vector.shape_cast %298 : vector<12xf32> to vector<12x1xf32>
    %300 = vector.broadcast %299 : vector<12x1xf32> to vector<12x12xf32>
    %301 = arith.subf %297, %300 : vector<12x12xf32>
    %302 = math.exp %301 : vector<12x12xf32>
    %cst_117 = arith.constant dense<0.000000e+00> : vector<12xf32>
    %303 = vector.multi_reduction <add>, %302, %cst_117 [1] : vector<12x12xf32> to vector<12xf32>
    %304 = vector.shape_cast %303 : vector<12xf32> to vector<12x1xf32>
    %305 = tpu.reciprocal %304 {approx = true} : vector<12x1xf32> -> vector<12x1xf32>
    %306 = vector.broadcast %305 : vector<12x1xf32> to vector<12x12xf32>
    %307 = arith.mulf %302, %306 : vector<12x12xf32>
    %308 = arith.truncf %307 : vector<12x12xf32> to vector<12x12xbf16>
    %cst_118 = arith.constant dense<0.000000e+00> : vector<12x8xf32>
    %309 = tpu.matmul %308, %296, %cst_118 {dimension_numbers = #tpu.dot_dimension_numbers<[1], [0], [0], [1], [0, 0, 1, 1], [], []>} : vector<12x12xbf16>, vector<12x8xbf16>, vector<12x8xf32> -> vector<12x8xf32>
    %310 = vector.extract_strided_slice %252 {offsets = [0, 24], sizes = [12, 8], strides = [1, 1]} : vector<12x96xf32> to vector<12x8xf32>
    %311 = arith.truncf %310 : vector<12x8xf32> to vector<12x8xbf16>
    %312 = vector.extract_strided_slice %252 {offsets = [0, 56], sizes = [12, 8], strides = [1, 1]} : vector<12x96xf32> to vector<12x8xf32>
    %313 = arith.truncf %312 : vector<12x8xf32> to vector<12x8xbf16>
    %314 = vector.extract_strided_slice %252 {offsets = [0, 88], sizes = [12, 8], strides = [1, 1]} : vector<12x96xf32> to vector<12x8xf32>
    %315 = arith.truncf %314 : vector<12x8xf32> to vector<12x8xbf16>
    %cst_119 = arith.constant dense<0.000000e+00> : vector<12x12xf32>
    %316 = tpu.matmul %311, %313, %cst_119 {dimension_numbers = #tpu.dot_dimension_numbers<[1], [1], [0], [0], [0, 0, 1, 0], [], []>} : vector<12x8xbf16>, vector<12x8xbf16>, vector<12x12xf32> -> vector<12x12xf32>
    %cst_120 = arith.constant dense<0xFF800000> : vector<12xf32>
    %317 = vector.multi_reduction <maximumf>, %316, %cst_120 [1] : vector<12x12xf32> to vector<12xf32>
    %318 = vector.shape_cast %317 : vector<12xf32> to vector<12x1xf32>
    %319 = vector.broadcast %318 : vector<12x1xf32> to vector<12x12xf32>
    %320 = arith.subf %316, %319 : vector<12x12xf32>
    %321 = math.exp %320 : vector<12x12xf32>
    %cst_121 = arith.constant dense<0.000000e+00> : vector<12xf32>
    %322 = vector.multi_reduction <add>, %321, %cst_121 [1] : vector<12x12xf32> to vector<12xf32>
    %323 = vector.shape_cast %322 : vector<12xf32> to vector<12x1xf32>
    %324 = tpu.reciprocal %323 {approx = true} : vector<12x1xf32> -> vector<12x1xf32>
    %325 = vector.broadcast %324 : vector<12x1xf32> to vector<12x12xf32>
    %326 = arith.mulf %321, %325 : vector<12x12xf32>
    %327 = arith.truncf %326 : vector<12x12xf32> to vector<12x12xbf16>
    %cst_122 = arith.constant dense<0.000000e+00> : vector<12x8xf32>
    %328 = tpu.matmul %327, %315, %cst_122 {dimension_numbers = #tpu.dot_dimension_numbers<[1], [0], [0], [1], [0, 0, 1, 1], [], []>} : vector<12x12xbf16>, vector<12x8xbf16>, vector<12x8xf32> -> vector<12x8xf32>
    %329 = tpu.concatenate %271, %290, %309, %328 in 1 : vector<12x8xf32>, vector<12x8xf32>, vector<12x8xf32>, vector<12x8xf32> -> vector<12x32xf32>
    %330 = arith.truncf %329 : vector<12x32xf32> to vector<12x32xbf16>
    %c1_123 = arith.constant 1 : index
    %c0_124 = arith.constant 0 : index
    %c0_125 = arith.constant 0 : index
    %331 = vector.load %arg9[%c1_123, %c0_124, %c0_125] : memref<2x32x32xbf16, #tpu.memory_space<vmem>>, vector<1x32x32xbf16>
    %332 = vector.shape_cast %331 : vector<1x32x32xbf16> to vector<32x32xbf16>
    %cst_126 = arith.constant dense<0.000000e+00> : vector<12x32xf32>
    %333 = tpu.matmul %330, %332, %cst_126 {dimension_numbers = #tpu.dot_dimension_numbers<[1], [0], [0], [1], [0, 0, 1, 1], [], []>} : vector<12x32xbf16>, vector<32x32xbf16>, vector<12x32xf32> -> vector<12x32xf32>
    %c1_127 = arith.constant 1 : index
    %c0_128 = arith.constant 0 : index
    %c0_129 = arith.constant 0 : index
    %334 = vector.load %arg10[%c1_127, %c0_128, %c0_129] : memref<2x1x32xf32, #tpu.memory_space<vmem>>, vector<1x1x32xf32>
    %335 = vector.shape_cast %334 : vector<1x1x32xf32> to vector<1x32xf32>
    %336 = vector.broadcast %335 : vector<1x32xf32> to vector<12x32xf32>
    %337 = arith.addf %333, %336 : vector<12x32xf32>
    %338 = arith.addf %218, %337 : vector<12x32xf32>
    %c1_130 = arith.constant 1 : index
    %c0_131 = arith.constant 0 : index
    %c0_132 = arith.constant 0 : index
    %339 = vector.load %arg11[%c1_130, %c0_131, %c0_132] : memref<2x1x32xf32, #tpu.memory_space<vmem>>, vector<1x1x32xf32>
    %340 = vector.shape_cast %339 : vector<1x1x32xf32> to vector<1x32xf32>
    %c1_133 = arith.constant 1 : index
    %c0_134 = arith.constant 0 : index
    %c0_135 = arith.constant 0 : index
    %341 = vector.load %arg12[%c1_133, %c0_134, %c0_135] : memref<2x1x32xf32, #tpu.memory_space<vmem>>, vector<1x1x32xf32>
    %342 = vector.shape_cast %341 : vector<1x1x32xf32> to vector<1x32xf32>
    %cst_136 = arith.constant dense<0.000000e+00> : vector<12xf32>
    %343 = vector.multi_reduction <add>, %338, %cst_136 [1] : vector<12x32xf32> to vector<12xf32>
    %344 = vector.shape_cast %343 : vector<12xf32> to vector<12x1xf32>
    %cst_137 = arith.constant 3.200000e+01 : f32
    %345 = vector.broadcast %cst_137 : f32 to vector<12x1xf32>
    %346 = arith.divf %344, %345 : vector<12x1xf32>
    %347 = vector.broadcast %346 : vector<12x1xf32> to vector<12x32xf32>
    %348 = arith.subf %338, %347 : vector<12x32xf32>
    %349 = arith.mulf %348, %348 : vector<12x32xf32>
    %cst_138 = arith.constant dense<0.000000e+00> : vector<12xf32>
    %350 = vector.multi_reduction <add>, %349, %cst_138 [1] : vector<12x32xf32> to vector<12xf32>
    %351 = vector.shape_cast %350 : vector<12xf32> to vector<12x1xf32>
    %cst_139 = arith.constant 3.200000e+01 : f32
    %352 = vector.broadcast %cst_139 : f32 to vector<12x1xf32>
    %353 = arith.divf %351, %352 : vector<12x1xf32>
    %354 = vector.broadcast %346 : vector<12x1xf32> to vector<12x32xf32>
    %355 = arith.subf %338, %354 : vector<12x32xf32>
    %cst_140 = arith.constant 9.99999974E-6 : f32
    %356 = vector.broadcast %cst_140 : f32 to vector<12x1xf32>
    %357 = arith.addf %353, %356 : vector<12x1xf32>
    %358 = math.rsqrt %357 : vector<12x1xf32>
    %359 = vector.broadcast %358 : vector<12x1xf32> to vector<12x32xf32>
    %360 = arith.mulf %355, %359 : vector<12x32xf32>
    %361 = vector.broadcast %340 : vector<1x32xf32> to vector<12x32xf32>
    %362 = arith.mulf %360, %361 : vector<12x32xf32>
    %363 = vector.broadcast %342 : vector<1x32xf32> to vector<12x32xf32>
    %364 = arith.addf %362, %363 : vector<12x32xf32>
    %365 = arith.truncf %364 : vector<12x32xf32> to vector<12x32xbf16>
    %c1_141 = arith.constant 1 : index
    %c0_142 = arith.constant 0 : index
    %c0_143 = arith.constant 0 : index
    %366 = vector.load %arg13[%c1_141, %c0_142, %c0_143] : memref<2x32x128xbf16, #tpu.memory_space<vmem>>, vector<1x32x128xbf16>
    %367 = vector.shape_cast %366 : vector<1x32x128xbf16> to vector<32x128xbf16>
    %cst_144 = arith.constant dense<0.000000e+00> : vector<12x128xf32>
    %368 = tpu.matmul %365, %367, %cst_144 {dimension_numbers = #tpu.dot_dimension_numbers<[1], [0], [0], [1], [0, 0, 1, 1], [], []>} : vector<12x32xbf16>, vector<32x128xbf16>, vector<12x128xf32> -> vector<12x128xf32>
    %c1_145 = arith.constant 1 : index
    %c0_146 = arith.constant 0 : index
    %c0_147 = arith.constant 0 : index
    %369 = vector.load %arg14[%c1_145, %c0_146, %c0_147] : memref<2x1x128xf32, #tpu.memory_space<vmem>>, vector<1x1x128xf32>
    %370 = vector.shape_cast %369 : vector<1x1x128xf32> to vector<1x128xf32>
    %371 = vector.broadcast %370 : vector<1x128xf32> to vector<12x128xf32>
    %372 = arith.addf %368, %371 : vector<12x128xf32>
    %cst_148 = arith.constant 5.000000e-01 : f32
    %373 = vector.broadcast %cst_148 : f32 to vector<12x128xf32>
    %374 = arith.mulf %373, %372 : vector<12x128xf32>
    %cst_149 = arith.constant 0.707106769 : f32
    %375 = vector.broadcast %cst_149 : f32 to vector<12x128xf32>
    %376 = arith.mulf %372, %375 : vector<12x128xf32>
    %377 = math.absf %376 : vector<12x128xf32>
    %cst_150 = arith.constant 0.327591091 : f32
    %378 = vector.broadcast %cst_150 : f32 to vector<12x128xf32>
    %379 = arith.mulf %378, %377 : vector<12x128xf32>
    %cst_151 = arith.constant 1.000000e+00 : f32
    %380 = vector.broadcast %cst_151 : f32 to vector<12x128xf32>
    %381 = arith.addf %380, %379 : vector<12x128xf32>
    %cst_152 = arith.constant 1.000000e+00 : f32
    %382 = vector.broadcast %cst_152 : f32 to vector<12x128xf32>
    %383 = arith.divf %382, %381 : vector<12x128xf32>
    %cst_153 = arith.constant 1.06140542 : f32
    %384 = vector.broadcast %cst_153 : f32 to vector<12x128xf32>
    %385 = arith.mulf %384, %383 : vector<12x128xf32>
    %cst_154 = arith.constant -1.45315206 : f32
    %386 = vector.broadcast %cst_154 : f32 to vector<12x128xf32>
    %387 = arith.addf %385, %386 : vector<12x128xf32>
    %388 = arith.mulf %387, %383 : vector<12x128xf32>
    %cst_155 = arith.constant 1.42141378 : f32
    %389 = vector.broadcast %cst_155 : f32 to vector<12x128xf32>
    %390 = arith.addf %388, %389 : vector<12x128xf32>
    %391 = arith.mulf %390, %383 : vector<12x128xf32>
    %cst_156 = arith.constant -0.284496725 : f32
    %392 = vector.broadcast %cst_156 : f32 to vector<12x128xf32>
    %393 = arith.addf %391, %392 : vector<12x128xf32>
    %394 = arith.mulf %393, %383 : vector<12x128xf32>
    %cst_157 = arith.constant 0.254829586 : f32
    %395 = vector.broadcast %cst_157 : f32 to vector<12x128xf32>
    %396 = arith.addf %394, %395 : vector<12x128xf32>
    %397 = arith.mulf %396, %383 : vector<12x128xf32>
    %cst_158 = arith.constant 0.000000e+00 : f32
    %398 = vector.broadcast %cst_158 : f32 to vector<12x128xf32>
    %399 = arith.subf %398, %377 : vector<12x128xf32>
    %400 = arith.mulf %399, %377 : vector<12x128xf32>
    %401 = math.exp %400 : vector<12x128xf32>
    %402 = arith.mulf %397, %401 : vector<12x128xf32>
    %cst_159 = arith.constant 1.000000e+00 : f32
    %403 = vector.broadcast %cst_159 : f32 to vector<12x128xf32>
    %404 = arith.subf %403, %402 : vector<12x128xf32>
    %cst_160 = arith.constant 0.000000e+00 : f32
    %405 = vector.broadcast %cst_160 : f32 to vector<12x128xf32>
    %406 = arith.cmpf oge, %376, %405 : vector<12x128xf32>
    %cst_161 = arith.constant 0.000000e+00 : f32
    %407 = vector.broadcast %cst_161 : f32 to vector<12x128xf32>
    %408 = arith.subf %407, %404 : vector<12x128xf32>
    %409 = arith.select %406, %404, %408 : vector<12x128xi1>, vector<12x128xf32>
    %cst_162 = arith.constant 1.000000e+00 : f32
    %410 = vector.broadcast %cst_162 : f32 to vector<12x128xf32>
    %411 = arith.addf %410, %409 : vector<12x128xf32>
    %412 = arith.mulf %374, %411 : vector<12x128xf32>
    %413 = arith.truncf %412 : vector<12x128xf32> to vector<12x128xbf16>
    %c1_163 = arith.constant 1 : index
    %c0_164 = arith.constant 0 : index
    %c0_165 = arith.constant 0 : index
    %414 = vector.load %arg15[%c1_163, %c0_164, %c0_165] : memref<2x128x32xbf16, #tpu.memory_space<vmem>>, vector<1x128x32xbf16>
    %415 = vector.shape_cast %414 : vector<1x128x32xbf16> to vector<128x32xbf16>
    %cst_166 = arith.constant dense<0.000000e+00> : vector<12x32xf32>
    %416 = tpu.matmul %413, %415, %cst_166 {dimension_numbers = #tpu.dot_dimension_numbers<[1], [0], [0], [1], [0, 0, 1, 1], [], []>} : vector<12x128xbf16>, vector<128x32xbf16>, vector<12x32xf32> -> vector<12x32xf32>
    %c1_167 = arith.constant 1 : index
    %c0_168 = arith.constant 0 : index
    %c0_169 = arith.constant 0 : index
    %417 = vector.load %arg16[%c1_167, %c0_168, %c0_169] : memref<2x1x32xf32, #tpu.memory_space<vmem>>, vector<1x1x32xf32>
    %418 = vector.shape_cast %417 : vector<1x1x32xf32> to vector<1x32xf32>
    %419 = vector.broadcast %418 : vector<1x32xf32> to vector<12x32xf32>
    %420 = arith.addf %416, %419 : vector<12x32xf32>
    %421 = arith.addf %338, %420 : vector<12x32xf32>
    %c0_170 = arith.constant 0 : index
    %c0_171 = arith.constant 0 : index
    %422 = vector.load %arg17[%c0_170, %c0_171] : memref<1x32xf32, #tpu.memory_space<vmem>>, vector<1x32xf32>
    %c0_172 = arith.constant 0 : index
    %c0_173 = arith.constant 0 : index
    %423 = vector.load %arg18[%c0_172, %c0_173] : memref<1x32xf32, #tpu.memory_space<vmem>>, vector<1x32xf32>
    %cst_174 = arith.constant dense<0.000000e+00> : vector<12xf32>
    %424 = vector.multi_reduction <add>, %421, %cst_174 [1] : vector<12x32xf32> to vector<12xf32>
    %425 = vector.shape_cast %424 : vector<12xf32> to vector<12x1xf32>
    %cst_175 = arith.constant 3.200000e+01 : f32
    %426 = vector.broadcast %cst_175 : f32 to vector<12x1xf32>
    %427 = arith.divf %425, %426 : vector<12x1xf32>
    %428 = vector.broadcast %427 : vector<12x1xf32> to vector<12x32xf32>
    %429 = arith.subf %421, %428 : vector<12x32xf32>
    %430 = arith.mulf %429, %429 : vector<12x32xf32>
    %cst_176 = arith.constant dense<0.000000e+00> : vector<12xf32>
    %431 = vector.multi_reduction <add>, %430, %cst_176 [1] : vector<12x32xf32> to vector<12xf32>
    %432 = vector.shape_cast %431 : vector<12xf32> to vector<12x1xf32>
    %cst_177 = arith.constant 3.200000e+01 : f32
    %433 = vector.broadcast %cst_177 : f32 to vector<12x1xf32>
    %434 = arith.divf %432, %433 : vector<12x1xf32>
    %435 = vector.broadcast %427 : vector<12x1xf32> to vector<12x32xf32>
    %436 = arith.subf %421, %435 : vector<12x32xf32>
    %cst_178 = arith.constant 9.99999974E-6 : f32
    %437 = vector.broadcast %cst_178 : f32 to vector<12x1xf32>
    %438 = arith.addf %434, %437 : vector<12x1xf32>
    %439 = math.rsqrt %438 : vector<12x1xf32>
    %440 = vector.broadcast %439 : vector<12x1xf32> to vector<12x32xf32>
    %441 = arith.mulf %436, %440 : vector<12x32xf32>
    %442 = vector.broadcast %422 : vector<1x32xf32> to vector<12x32xf32>
    %443 = arith.mulf %441, %442 : vector<12x32xf32>
    %444 = vector.broadcast %423 : vector<1x32xf32> to vector<12x32xf32>
    %445 = arith.addf %443, %444 : vector<12x32xf32>
    %c0_179 = arith.constant 0 : index
    %c0_180 = arith.constant 0 : index
    %c0_181 = arith.constant 0 : index
    %446 = vector.load %arg19[%c0_179, %c0_180, %c0_181] : memref<1x12x32xf32, #tpu.memory_space<vmem>>, vector<1x12x32xf32>
    %447 = vector.shape_cast %446 : vector<1x12x32xf32> to vector<12x32xf32>
    %448 = vector.shape_cast %445 : vector<12x32xf32> to vector<1x12x32xf32>
    tpu.vector_store %arg19[%c0_179, %c0_180, %c0_181], %448 {strides = array<i32>} : memref<1x12x32xf32, #tpu.memory_space<vmem>>, vector<1x12x32xf32>,
    return
  }
  func.func @transform_0(%arg0: i32) -> (i32, i32, i32) {
    %c0_i32 = arith.constant 0 : i32
    %c0_i32_0 = arith.constant 0 : i32
    %c0_i32_1 = arith.constant 0 : i32
    return %arg0, %c0_i32, %c0_i32_0 : i32, i32, i32
  }
  func.func @transform_1(%arg0: i32) -> (i32, i32, i32) {
    %c0_i32 = arith.constant 0 : i32
    %c0_i32_0 = arith.constant 0 : i32
    %c0_i32_1 = arith.constant 0 : i32
    return %arg0, %c0_i32, %c0_i32_0 : i32, i32, i32
  }
  func.func @transform_2(%arg0: i32) -> (i32, i32) {
    %c0_i32 = arith.constant 0 : i32
    %c0_i32_0 = arith.constant 0 : i32
    %c0_i32_1 = arith.constant 0 : i32
    return %c0_i32, %c0_i32_0 : i32, i32
  }
  func.func @transform_3(%arg0: i32) -> (i32, i32) {
    %c0_i32 = arith.constant 0 : i32
    %c0_i32_0 = arith.constant 0 : i32
    %c0_i32_1 = arith.constant 0 : i32
    return %c0_i32, %c0_i32_0 : i32, i32
  }
  func.func @transform_4(%arg0: i32) -> (i32, i32, i32) {
    %c0_i32 = arith.constant 0 : i32
    %c0_i32_0 = arith.constant 0 : i32
    %c0_i32_1 = arith.constant 0 : i32
    %c0_i32_2 = arith.constant 0 : i32
    return %c0_i32, %c0_i32_0, %c0_i32_1 : i32, i32, i32
  }
  func.func @transform_5(%arg0: i32) -> (i32, i32, i32) {
    %c0_i32 = arith.constant 0 : i32
    %c0_i32_0 = arith.constant 0 : i32
    %c0_i32_1 = arith.constant 0 : i32
    %c0_i32_2 = arith.constant 0 : i32
    return %c0_i32, %c0_i32_0, %c0_i32_1 : i32, i32, i32
  }
  func.func @transform_6(%arg0: i32) -> (i32, i32, i32) {
    %c0_i32 = arith.constant 0 : i32
    %c0_i32_0 = arith.constant 0 : i32
    %c0_i32_1 = arith.constant 0 : i32
    %c0_i32_2 = arith.constant 0 : i32
    return %c0_i32, %c0_i32_0, %c0_i32_1 : i32, i32, i32
  }
  func.func @transform_7(%arg0: i32) -> (i32, i32, i32) {
    %c0_i32 = arith.constant 0 : i32
    %c0_i32_0 = arith.constant 0 : i32
    %c0_i32_1 = arith.constant 0 : i32
    %c0_i32_2 = arith.constant 0 : i32
    return %c0_i32, %c0_i32_0, %c0_i32_1 : i32, i32, i32
  }
  func.func @transform_8(%arg0: i32) -> (i32, i32, i32) {
    %c0_i32 = arith.constant 0 : i32
    %c0_i32_0 = arith.constant 0 : i32
    %c0_i32_1 = arith.constant 0 : i32
    %c0_i32_2 = arith.constant 0 : i32
    return %c0_i32, %c0_i32_0, %c0_i32_1 : i32, i32, i32
  }
  func.func @transform_9(%arg0: i32) -> (i32, i32, i32) {
    %c0_i32 = arith.constant 0 : i32
    %c0_i32_0 = arith.constant 0 : i32
    %c0_i32_1 = arith.constant 0 : i32
    %c0_i32_2 = arith.constant 0 : i32
    return %c0_i32, %c0_i32_0, %c0_i32_1 : i32, i32, i32
  }
  func.func @transform_10(%arg0: i32) -> (i32, i32, i32) {
    %c0_i32 = arith.constant 0 : i32
    %c0_i32_0 = arith.constant 0 : i32
    %c0_i32_1 = arith.constant 0 : i32
    %c0_i32_2 = arith.constant 0 : i32
    return %c0_i32, %c0_i32_0, %c0_i32_1 : i32, i32, i32
  }
  func.func @transform_11(%arg0: i32) -> (i32, i32, i32) {
    %c0_i32 = arith.constant 0 : i32
    %c0_i32_0 = arith.constant 0 : i32
    %c0_i32_1 = arith.constant 0 : i32
    %c0_i32_2 = arith.constant 0 : i32
    return %c0_i32, %c0_i32_0, %c0_i32_1 : i32, i32, i32
  }
  func.func @transform_12(%arg0: i32) -> (i32, i32, i32) {
    %c0_i32 = arith.constant 0 : i32
    %c0_i32_0 = arith.constant 0 : i32
    %c0_i32_1 = arith.constant 0 : i32
    %c0_i32_2 = arith.constant 0 : i32
    return %c0_i32, %c0_i32_0, %c0_i32_1 : i32, i32, i32
  }
  func.func @transform_13(%arg0: i32) -> (i32, i32, i32) {
    %c0_i32 = arith.constant 0 : i32
    %c0_i32_0 = arith.constant 0 : i32
    %c0_i32_1 = arith.constant 0 : i32
    %c0_i32_2 = arith.constant 0 : i32
    return %c0_i32, %c0_i32_0, %c0_i32_1 : i32, i32, i32
  }
  func.func @transform_14(%arg0: i32) -> (i32, i32, i32) {
    %c0_i32 = arith.constant 0 : i32
    %c0_i32_0 = arith.constant 0 : i32
    %c0_i32_1 = arith.constant 0 : i32
    %c0_i32_2 = arith.constant 0 : i32
    return %c0_i32, %c0_i32_0, %c0_i32_1 : i32, i32, i32
  }
  func.func @transform_15(%arg0: i32) -> (i32, i32, i32) {
    %c0_i32 = arith.constant 0 : i32
    %c0_i32_0 = arith.constant 0 : i32
    %c0_i32_1 = arith.constant 0 : i32
    %c0_i32_2 = arith.constant 0 : i32
    return %c0_i32, %c0_i32_0, %c0_i32_1 : i32, i32, i32
  }
  func.func @transform_16(%arg0: i32) -> (i32, i32) {
    %c0_i32 = arith.constant 0 : i32
    %c0_i32_0 = arith.constant 0 : i32
    %c0_i32_1 = arith.constant 0 : i32
    return %c0_i32, %c0_i32_0 : i32, i32
  }
  func.func @transform_17(%arg0: i32) -> (i32, i32) {
    %c0_i32 = arith.constant 0 : i32
    %c0_i32_0 = arith.constant 0 : i32
    %c0_i32_1 = arith.constant 0 : i32
    return %c0_i32, %c0_i32_0 : i32, i32
  }
  func.func @transform_18(%arg0: i32) -> (i32, i32, i32) {
    %c0_i32 = arith.constant 0 : i32
    %c0_i32_0 = arith.constant 0 : i32
    %c0_i32_1 = arith.constant 0 : i32
    return %arg0, %c0_i32, %c0_i32_0 : i32, i32, i32
  }
}

</mosaic_0001>

<bundles_post_ra>
// kernel: tpu_custom_call.1
= control target key start
LH: loop header
LB: loop body
LE: loop exit
PB: predicated region body
PF: predicated region fallthrough
CT: control target
= control target key end

     0   :  { %s3495_s27 = smov 0   ;;  %s4014_s0 = inlined_call_operand.vmem [shape: s32[2,8,1], index: 0, kind: input, shape index: {}]   ;;  %s4015_s1 = inlined_call_operand.vmem [shape: f32[2,4,1], index: 1, kind: input, shape index: {}]   ;;  %s4016_s2 = inlined_call_operand.vmem [shape: f32[64,32], index: 2, kind: input, shape index: {}]   ;;  %s4017_s3 = inlined_call_operand.vmem [shape: f32[16,32], index: 3, kind: input, shape index: {}]   ;;  %s4018_s4 = inlined_call_operand.vmem [shape: f32[2,1,32], index: 4, kind: input, shape index: {}]   ;;  %s4019_s5 = inlined_call_operand.vmem [shape: f32[2,1,32], index: 5, kind: input, shape index: {}]   ;;  %s4020_s6 = inlined_call_operand.vmem [shape: bf16[2,32,96], index: 6, kind: input, shape index: {}]   ;;  %s4021_s7 = inlined_call_operand.vmem [shape: f32[2,1,96], index: 7, kind: input, shape index: {}]   ;;  %s4022_s8 = inlined_call_operand.vmem [shape: bf16[2,32,32], index: 8, kind: input, shape index: {}]   ;;  %s4023_s9 = inlined_call_operand.vmem [shape: f32[2,1,32], index: 9, kind: input, shape index: {}]   ;;  %s4024_s10 = inlined_call_operand.vmem [shape: f32[2,1,32], index: 10, kind: input, shape index: {}]   ;;  %s4025_s11 = inlined_call_operand.vmem [shape: f32[2,1,32], index: 11, kind: input, shape index: {}]   ;;  %s4026_s12 = inlined_call_operand.vmem [shape: bf16[2,32,128], index: 12, kind: input, shape index: {}]   ;;  %s4027_s13 = inlined_call_operand.vmem [shape: f32[2,1,128], index: 13, kind: input, shape index: {}]   ;;  %s4028_s14 = inlined_call_operand.vmem [shape: bf16[2,128,32], index: 14, kind: input, shape index: {}]   ;;  %s4029_s15 = inlined_call_operand.vmem [shape: f32[2,1,32], index: 15, kind: input, shape index: {}]   ;;  %s4030_s16 = inlined_call_operand.vmem [shape: f32[1,32], index: 16, kind: input, shape index: {}]   ;;  %s4031_s17 = inlined_call_operand.vmem [shape: f32[1,32], index: 17, kind: input, shape index: {}]   ;;  %s4032_s18 = inlined_call_operand.vmem [shape: f32[2,12,32], index: 18, kind: output, shape index: {}]  }
   0x1   :  { %4043 = sst [smem:[#allocation2_spill]] %s4014_s0 }
   0x2   :  { %4044 = sst [smem:[#allocation3_spill]] %s4015_s1 }
   0x3   :  { %4045 = sst [smem:[#allocation4_spill]] %s4016_s2 }
   0x4 LB: > { %s2793_s28 = sadd.s32 4294967295, %s3381_s27   ;;  %p2797_p0 = scmp.ge.s32.totalorder %s3381_s27, 1  ;;  %s3381_s27 = sphi %s3495_s27, %s28_s27  }
   0x5   : > { %p520_p1 = scmp.lt.s32.totalorder %s3381_s27, 3 }
   0x7   : > { %p521_p2 = pnand %p2797_p0, %p520_p1 }
   0x8   : > { %p577_p3 = scmp.lt.s32.totalorder (!%p521_p2), %s2793_s28, 1  ;;  %s4046_s0 = sld [smem:[#allocation4_spill]] (!%p521_p2) }
   0x9   : > { %524 = sbr.rel (%p521_p2) target bundleno = 6113 (0x17e1), region = 92  ;;  %s4047_s26 = sld [smem:[#allocation2_spill]] (!%p521_p2) }
   0xa   : > { %s4048_s2 = sld [smem:[#allocation3_spill]] (!%p521_p2)  ;;  %s3386_s19 = smov (!%p521_p2), 112  }
   0xb   : > { %s3387_s1 = smov (!%p521_p2), 96   ;;  %s4037_s20 = smov (!%p521_p2), 88  }
   0xc   : > { %s3389_s21 = smov (!%p521_p2), 120   ;;  %s4036_s24 = smov (!%p521_p2), 56  }
   0xd   : > { %s3394_s25 = smov (!%p521_p2), 64  }
   0xe   : > { %v607_v0 = vld [vmem:[%s4046_s0 + $0x38] sm:$0xff]  ;;  %v3383_v1 = vmov 0   ;;  %v3384_v2 = vmov 0.0   ;;  %v606_v3 = vld [vmem:[%s4046_s0 + $0x30] sm:$0xff]  ;;  %s4059_s28 = smov (!%p577_p3, %s2793_s28), 1  ;;  %v605_v4 = vld [vmem:[%s4046_s0 + $0x28] sm:$0xff]  ;;  %v592_v12 = vlaneseq }
   0xf   : > { %3216 = vset.pattern.permute.xlu0 %v3383_v1  ;;  %2988 = vmatprep.subr.mxu1 %v3384_v2  ;;  %s2798_s22 = sshll.u32 %s4059_s28, 3  ;;  %v604_v5 = vld [vmem:[%s4046_s0 + $0x20] sm:$0xff]  ;;  %vm3385_vm0 = vmmov 0   ;;  %s2799_s30 = sshll.u32 %s4059_s28, 2  ;;  %v603_v7 = vld [vmem:[%s4046_s0 + $0x18] sm:$0xff]  ;;  %v602_v8 = vld [vmem:[%s4046_s0 + $0x10] sm:$0xff] }
  0x10   : > { %2989 = vmatpush3.msra.mxu1 %v607_v0  ;;  %3021 = vmatprep.subr.bf16.mxu0 %v3384_v2  ;;  %s580_s29 = scalar_lea.vmem %s4047_s26, %s2798_s22  ;;  %s584_s23 = scalar_lea.vmem %s4048_s2, %s2799_s30  ;;  %v601_v10 = vld [vmem:[%s4046_s0 + $0x8] sm:$0xff]  ;;  %v600_v11 = vld [vmem:[%s4046_s0] sm:$0xff]  ;;  %v593_v13 = vand.u32 127, %v592_v12  ;;  %vm609_vm1 = vcmask 523264   ;;  %vm691_vm3 = vcmask 261120   ;;  %vm695_vm4 = vcmask 257024  }
  0x11   : > { %2990 = vmatprep.subr.mxu1 %v3384_v2  ;;  %3004 = vmatprep.mubr.msk.f32.mxu1 %vm3385_vm0, %v3384_v2  ;;  %v591_v6 = vld [vmem:[%s580_s29] sm:$0xff]  ;;  %v3247_v33 = vld [vmem:[%s4020_s6 + $0x8] sm:$0xff]   ;;  %s3390_s2 = smov 80   ;;  %s4041_s22 = smov 104   ;;  %vm808_vm5 = vcmask 64512   ;;  %vm856_vm6 = vcmask 97280  }
  0x12   : > { %2991 = vmatpush3.msra.mxu1 %v606_v3  ;;  %3023 = vmatprep.mubr.msk.bf16.mxu0 %vm3385_vm0, %v3384_v2  ;;  %v683_v9 = vld [vmem:[%s584_s23] sm:$0xf]  ;;  %s4042_s23 = smov 72   ;;  %vm860_vm7 = vcmask 93184   ;;  %s4034_s26 = smov 48   ;;  %vm886_vm8 = vcmask 1045504  }
  0x13   : > { %2992 = vmatprep.subr.mxu1 %v3384_v2  ;;  %595 = vperm.xlu0 %3216, %v591_v6   ;;  %v608_v16 = vld [vmem:[%s4017_s3] sm:$0xff]  ;;  %s4035_s29 = smov 40   ;;  %s4038_s30 = smov 24   ;;  %vm1326_vm9 = vcmask 130048   ;;  %vm1329_vm10 = vcmask 195584  }
  0x14   : > { %2993 = vmatpush3.msra.mxu1 %v605_v4  ;;  %v3248_v34 = vld [vmem:[%s4020_s6] sm:$0xff]  }
  0x15   : > { %2994 = vmatprep.subr.mxu1 %v3384_v2  ;;  %v2804_v43 = vld [vmem:[%s4018_s4] ss:$0 sm:$0xff] }
  0x16   : > { %2995 = vmatpush3.msra.mxu1 %v604_v5  ;;  %v2805_v47 = vld [vmem:[%s4019_s5] ss:$0 sm:$0xff] }
  0x17   : > { %2996 = vmatprep.subr.mxu1 %v3384_v2  ;;  %686 = vperm.xlu0 %3216, %v683_v9   ;;  %v2806_v53 = vld [vmem:[%s4021_s7] ss:$0 sm:$0xff] }
  0x18   : > { %2997 = vmatpush3.msra.mxu1 %v603_v7 }
  0x19   : > { %2998 = vmatprep.subr.mxu1 %v3384_v2 }
  0x1a   : > { %2999 = vmatpush3.msra.mxu1 %v602_v8 }
  0x1b   : > { %3000 = vmatprep.subr.mxu1 %v3384_v2 }
  0x1c   : > { %3001 = vmatpush3.msra.mxu1 %v601_v10 }
  0x1d   : > { %3002 = vmatprep.subr.mxu1 %v3384_v2 }
  0x1e   : > { %3003 = vmatpush3.msra.mxu1 %v600_v11 }
  0x1f   : > { %3007 = vmatprep.subr.bf16.mxu1 %v3384_v2 }
  0x8e   : > { %v596_v14 = vpop.permute.xlu0 %595 }
  0x8f   : > { %vm597_vm2 = vcmp.eq.s32.totalorder %v596_v14, %v593_v13 }
  0x90   : > { %v2802_v15 = vsel %vm597_vm2, 1.0, %v3384_v2 }
  0x91   : > { %3005 = vmatmul.mubr.msk.f32.vlgmr.msra.gmra.mxu1 %vm609_vm1, %v2802_v15 }
  0x92   : > { %3011 = vmatprep.mubr.msk.bf16.mxu1 %vm3385_vm0, %v3384_v2  ;;  %v3561_v21 = vpop.permute.xlu0 %686  ;;  %3008 = vmatpush3.bf16.msra.mxu1 %v3247_v33 }
  0x93   : > { %v696_v22 = vsel %vm695_vm4, %v3561_v21, 0.0  ;;  %3009 = vmatprep.subr.bf16.mxu1 %v3384_v2 }
  0x96   : > { %3010 = vmatpush3.bf16.msra.mxu1 %v3248_v34 }
  0x97   : > { %3015 = vmatprep.subr.bf16.mxu1 %v3384_v2 }
 0x151   : > { %v679_v17 = vpop.f32.mrf.mxu1 }
 0x152   : > { %v3557_v18 = vadd.f32 %v679_v17, %v608_v16 }
 0x153   : > { %v3006_v19 = vpop.f32.mrf.mxu1 }
 0x154   : > { %v692_v20 = vsel %vm691_vm3, %v3557_v18, 0.0 }
 0x155   : > { %693 = vadd.xlane.f32.xlu1 %v692_v20 }
 0x159   : > { %697 = vadd.xlane.f32.xlu1 %v696_v22 }
 0x1de   : > { %v694_v23 = vpop.xlane.xlu1 %693 }
 0x1df   : > { %v700_v24 = vmul.f32 0.03125, %v694_v23 }
 0x1e1   : > { %v702_v25 = vsub.f32 %v3557_v18, %v700_v24 }
 0x1e2   : > { %v698_v26 = vpop.xlane.xlu1 %697 }
 0x1e3   : > { %v701_v27 = vmul.f32 0.03125, %v698_v26  ;;  %v704_v28 = vmul.f32 %v702_v25, %v702_v25 }
 0x1e5   : > { %v703_v29 = vsub.f32 %v3561_v21, %v701_v27  ;;  %v706_v30 = vsel %vm691_vm3, %v704_v28, 0.0 }
 0x1e6   : > { %707 = vadd.xlane.f32.xlu0 %v706_v30 }
 0x1e7   : > { %v705_v31 = vmul.f32 %v703_v29, %v703_v29 }
 0x1e9   : > { %v709_v32 = vsel %vm695_vm4, %v705_v31, 0.0 }
 0x1ea   : > { %710 = vadd.xlane.f32.xlu1 %v709_v32 }
 0x26f   : > { %v708_v35 = vpop.xlane.xlu0 %707 }
 0x270   : > { %v712_v36 = vmul.f32 0.03125, %v708_v35 }
 0x272   : > { %v714_v37 = vadd.f32 1e-05, %v712_v36 }
 0x273   : > { %v711_v38 = vpop.xlane.xlu1 %710 }
 0x274   : > { %3275 = vrsqrt.f32 %v714_v37  ;;  %v713_v39 = vmul.f32 0.03125, %v711_v38 }
 0x276   : > { %v715_v40 = vadd.f32 1e-05, %v713_v39 }
 0x278   : > { %3277 = vrsqrt.f32 %v715_v40 }
 0x281   : > { %v3276_v41 = vpop.eup %3275 }
 0x282   : > { %v718_v42 = vmul.f32 %v3276_v41, %v702_v25 }
 0x284   : > { %v726_v46 = vmul.f32 %v2804_v43, %v718_v42 }
 0x285   : > { %v3278_v44 = vpop.eup %3277 }
 0x286   : > { %v719_v45 = vmul.f32 %v3278_v44, %v703_v29  ;;  %v734_v49 = vadd.f32 %v2805_v47, %v726_v46 }
 0x288   : > { %v727_v48 = vmul.f32 %v2804_v43, %v719_v45 }
 0x28a   : > { %v735_v50 = vadd.f32 %v2805_v47, %v727_v48 }
 0x28c   : > { %v736_v51 = vpack.c.bf16 %v735_v50, %v734_v49 }
 0x28e   : > { %3012 = vmatmul.mubr.msk.bf16.vlgmr.msra.gmra.mxu1 %vm691_vm3, %v736_v51 }
 0x28f   : > { %3017 = vmatprep.mubr.msk.bf16.mxu1 %vm3385_vm0, %v3384_v2 }
 0x34e   : > { %v797_v52 = vpop.f32.mrf.mxu1 }
 0x34f   : > { %v798_v56 = vadd.f32 %v2806_v53, %v797_v52 }
 0x350   : > { %v3013_v54 = vpop.f32.mrf.mxu1 }
 0x352   : > { %v800_v55 = vpop.f32.mrf.mxu1 }
 0x353   : > { %v801_v57 = vadd.f32 %v2806_v53, %v800_v55 }
 0x354   : > { %v3014_v58 = vpop.f32.mrf.mxu1 }
 0x355   : > { %v3589_v59 = vpack.c.bf16 %v801_v57, %v798_v56 }
 0x357   : > { %1054 = vrot.lane.b32.xlu0 %v3589_v59, %s3386_s19  ;;  %806 = vrot.lane.b32.xlu1 %v3589_v59, %s3387_s1 }
 0x35b   : > { %933 = vrot.lane.b32.xlu1 %v3589_v59, %s4037_s20  ;;  %s4049_s20 = smov 72  }
 0x35f   : > { %931 = vrot.lane.b32.xlu1 %v3589_v59, %s3389_s21 }
 0x363   : > { %1056 = vrot.lane.b32.xlu1 %v3589_v59, %s3390_s2 }
 0x367   : > { %1179 = vrot.lane.b32.xlu1 %v3589_v59, %s4042_s23  ;;  %s2910_s23 = sshll.u32 %s4059_s28, 4 }
 0x36b   : > { %1177 = vrot.lane.b32.xlu1 %v3589_v59, %s4041_s22 }
 0x3c9   : > { %v807_v60 = vpop.permute.xlu1 %806  ;;  %v1055_v5 = vpop.permute.xlu0 %1054 }
 0x3ca   : > { %v813_v61 = vsel %vm808_vm5, %v807_v60, 0 }
 0x3cb   : > { %3016 = vmatpush3.bf16.xpose.msra.mxu1 %v813_v61 }
 0x3cc   : > { %3027 = vmatprep.subr.bf16.mxu1 %v3384_v2 }
 0x3cd   : > { %v934_v62 = vpop.permute.xlu1 %933 }
 0x3ce   : > { %v939_v0 = vsel %vm808_vm5, %v934_v62, 0 }
 0x3d1   : > { %v932_v63 = vpop.permute.xlu1 %931 }
 0x3d2   : > { %3018 = vmatmul.mubr.msk.bf16.vlgmr.msra.gmra.mxu1 %vm808_vm5, %v3589_v59 }
 0x3d3   : > { %3028 = vmatpush3.bf16.xpose.msra.mxu1 %v939_v0  ;;  %3029 = vmatprep.mubr.msk.bf16.mxu1 %vm3385_vm0, %v3384_v2 }
 0x3d4   : > { %3039 = vmatprep.subr.bf16.mxu1 %v3384_v2 }
 0x3d5   : > { %v1057_v1 = vpop.permute.xlu1 %1056 }
 0x3d6   : > { %v1062_v3 = vsel %vm808_vm5, %v1057_v1, 0 }
 0x3d9   : > { %v1180_v4 = vpop.permute.xlu1 %1179 }
 0x3da   : > { %3030 = vmatmul.mubr.msk.bf16.vlgmr.msra.gmra.mxu1 %vm808_vm5, %v932_v63  ;;  %v1185_v6 = vsel %vm808_vm5, %v1180_v4, 0 }
 0x3db   : > { %3040 = vmatpush3.bf16.xpose.msra.mxu1 %v1062_v3  ;;  %3041 = vmatprep.mubr.msk.bf16.mxu1 %vm3385_vm0, %v3384_v2 }
 0x3dc   : > { %3051 = vmatprep.subr.bf16.mxu1 %v3384_v2 }
 0x3dd   : > { %v1178_v7 = vpop.permute.xlu1 %1177 }
 0x3e2   : > { %3042 = vmatmul.mubr.msk.bf16.vlgmr.msra.gmra.mxu1 %vm808_vm5, %v1055_v5 }
 0x3e3   : > { %3052 = vmatpush3.bf16.xpose.msra.mxu1 %v1185_v6  ;;  %3053 = vmatprep.mubr.msk.bf16.mxu1 %vm3385_vm0, %v3384_v2 }
 0x3e4   : > { %3063 = vmatprep.subr.bf16.mxu1 %v3384_v2 }
 0x3ea   : > { %3054 = vmatmul.mubr.msk.bf16.vlgmr.msra.gmra.mxu1 %vm808_vm5, %v1178_v7 }
 0x3eb   : > { %3067 = vmatprep.mubr.msk.bf16.mxu1 %vm3385_vm0, %v3384_v2 }
 0x492   : > { %v849_v8 = vpop.f32.mrf.mxu1 }
 0x493   : > { %v857_v9 = vsel %vm856_vm6, %v849_v8, -inf }
 0x494   : > { %858 = vmax.xlane.f32.xlu1 %v857_v9  ;;  %v3019_v10 = vpop.f32.mrf.mxu1 }
 0x496   : > { %v852_v11 = vpop.f32.mrf.mxu1 }
 0x497   : > { %v861_v12 = vsel %vm860_vm7, %v852_v11, -inf }
 0x498   : > { %862 = vmax.xlane.f32.xlu0 %v861_v12  ;;  %v3020_v13 = vpop.f32.mrf.mxu1 }
 0x49a   : > { %v975_v14 = vpop.f32.mrf.mxu1 }
 0x49b   : > { %v982_v15 = vsel %vm856_vm6, %v975_v14, -inf }
 0x49c   : > { %983 = vmax.xlane.f32.xlu1 %v982_v15  ;;  %v3031_v16 = vpop.f32.mrf.mxu1 }
 0x49e   : > { %v978_v17 = vpop.f32.mrf.mxu1 }
 0x49f   : > { %v985_v19 = vsel %vm860_vm7, %v978_v17, -inf }
 0x4a0   : > { %986 = vmax.xlane.f32.xlu1 %v985_v19  ;;  %v3032_v20 = vpop.f32.mrf.mxu1 }
 0x4a2   : > { %v1098_v22 = vpop.f32.mrf.mxu1 }
 0x4a3   : > { %v1105_v23 = vsel %vm856_vm6, %v1098_v22, -inf }
 0x4a4   : > { %1106 = vmax.xlane.f32.xlu0 %v1105_v23  ;;  %v3043_v24 = vpop.f32.mrf.mxu1 }
 0x4a6   : > { %v1101_v25 = vpop.f32.mrf.mxu1 }
 0x4a7   : > { %v1108_v26 = vsel %vm860_vm7, %v1101_v25, -inf }
 0x4a8   : > { %1109 = vmax.xlane.f32.xlu1 %v1108_v26  ;;  %v3044_v27 = vpop.f32.mrf.mxu1 }
 0x4aa   : > { %v1221_v28 = vpop.f32.mrf.mxu1 }
 0x4ab   : > { %v1228_v29 = vsel %vm856_vm6, %v1221_v28, -inf }
 0x4ac   : > { %1229 = vmax.xlane.f32.xlu0 %v1228_v29  ;;  %v3055_v30 = vpop.f32.mrf.mxu1 }
 0x4ae   : > { %v1224_v31 = vpop.f32.mrf.mxu1 }
 0x4af   : > { %v1231_v32 = vsel %vm860_vm7, %v1224_v31, -inf }
 0x4b0   : > { %1232 = vmax.xlane.f32.xlu1 %v1231_v32  ;;  %v3056_v33 = vpop.f32.mrf.mxu1 }
 0x51d   : > { %v859_v34 = vpop.xlane.xlu1 %858 }
 0x51e   : > { %v864_v35 = vsub.f32 %v849_v8, %v859_v34 }
 0x520   : > { %v866_v36 = vmul.f32 1.442695, %v864_v35 }
 0x521   : > { %v863_v37 = vpop.xlane.xlu0 %862 }
 0x522   : > { %3279 = vpow2.f32 %v866_v36  ;;  %v865_v38 = vsub.f32 %v852_v11, %v863_v37 }
 0x524   : > { %v868_v39 = vmul.f32 1.442695, %v865_v38 }
 0x525   : > { %v984_v40 = vpop.xlane.xlu1 %983 }
 0x526   : > { %3281 = vpow2.f32 %v868_v39  ;;  %v988_v41 = vsub.f32 %v975_v14, %v984_v40 }
 0x528   : > { %v990_v42 = vmul.f32 1.442695, %v988_v41 }
 0x529   : > { %v987_v49 = vpop.xlane.xlu1 %986 }
 0x52a   : > { %3283 = vpow2.f32 %v990_v42  ;;  %v989_v50 = vsub.f32 %v978_v17, %v987_v49 }
 0x52c   : > { %v992_v54 = vmul.f32 1.442695, %v989_v50 }
 0x52d   : > { %v1107_v51 = vpop.xlane.xlu0 %1106 }
 0x52e   : > { %v1111_v53 = vsub.f32 %v1098_v22, %v1107_v51  ;;  %3285 = vpow2.f32 %v992_v54 }
 0x52f   : > { %v3634_v43 = vpop.eup %3279 }
 0x530   : > { %v870_v44 = vsel %vm856_vm6, %v3634_v43, 0.0  ;;  %v1113_v58 = vmul.f32 1.442695, %v1111_v53 }
 0x531   : > { %871 = vadd.xlane.f32.xlu0 %v870_v44  ;;  %v1110_v52 = vpop.xlane.xlu1 %1109 }
 0x532   : > { %v1112_v55 = vsub.f32 %v1101_v25, %v1110_v52  ;;  %3287 = vpow2.f32 %v1113_v58 }
 0x533   : > { %v3282_v45 = vpop.eup %3281 }
 0x534   : > { %v873_v46 = vsel %vm860_vm7, %v3282_v45, 0.0  ;;  %v1115_v61 = vmul.f32 1.442695, %v1112_v55 }
 0x535   : > { %874 = vadd.xlane.f32.xlu1 %v873_v46  ;;  %v1230_v56 = vpop.xlane.xlu0 %1229 }
 0x536   : > { %v1234_v60 = vsub.f32 %v1221_v28, %v1230_v56  ;;  %3289 = vpow2.f32 %v1115_v61  ;;  %v3249_v56 = vld [vmem:[%s4022_s8 + $0x8] sm:$0xff]  }
 0x537   : > { %v3639_v47 = vpop.eup %3283  ;;  %3064 = vmatpush3.bf16.msra.mxu1 %v3249_v56 }
 0x538   : > { %v994_v48 = vsel %vm856_vm6, %v3639_v47, 0.0  ;;  %v1236_v63 = vmul.f32 1.442695, %v1234_v60  ;;  %3065 = vmatprep.subr.bf16.mxu1 %v3384_v2 }
 0x539   : > { %995 = vadd.xlane.f32.xlu0 %v994_v48  ;;  %v1233_v57 = vpop.xlane.xlu1 %1232 }
 0x53a   : > { %v1235_v62 = vsub.f32 %v1224_v31, %v1233_v57  ;;  %3291 = vpow2.f32 %v1236_v63 }
 0x53b   : > { %v3286_v1 = vpop.eup %3285 }
 0x53c   : > { %v1238_v0 = vmul.f32 1.442695, %v1235_v62  ;;  %v997_v4 = vsel %vm860_vm7, %v3286_v1, 0.0  ;;  %v3250_v62 = vld [vmem:[%s4022_s8] sm:$0xff]  }
 0x53d   : > { %3066 = vmatpush3.bf16.msra.mxu1 %v3250_v62 }
 0x53e   : > { %3293 = vpow2.f32 %v1238_v0  ;;  %3079 = vmatprep.subr.bf16.mxu1 %v3384_v2 }
 0x53f   : > { %v3647_v3 = vpop.eup %3287 }
 0x540   : > { %v1117_v7 = vsel %vm856_vm6, %v3647_v3, 0.0 }
 0x543   : > { %v3290_v5 = vpop.eup %3289 }
 0x544   : > { %v1120_v8 = vsel %vm860_vm7, %v3290_v5, 0.0 }
 0x546   : > { %1005 = vrot.lane.b32.xlu1 %v3589_v59, %s4036_s24  ;;  %s4050_s24 = smov 104  }
 0x547   : > { %v3650_v6 = vpop.eup %3291 }
 0x548   : > { %v1240_v10 = vsel %vm856_vm6, %v3650_v6, 0.0 }
 0x54b   : > { %v3655_v9 = vpop.eup %3293 }
 0x54c   : > { %v1243_v11 = vsel %vm860_vm7, %v3655_v9, 0.0 }
 0x54f   : > { %881 = vrot.lane.b32.xlu0 %v3589_v59, %s3394_s25 }
 0x56a   : > { %998 = vadd.xlane.f32.xlu1 %v997_v4 }
 0x56e   : > { %1118 = vadd.xlane.f32.xlu0 %v1117_v7  ;;  %1121 = vadd.xlane.f32.xlu1 %v1120_v8 }
 0x572   : > { %1241 = vadd.xlane.f32.xlu0 %v1240_v10  ;;  %1244 = vadd.xlane.f32.xlu1 %v1243_v11 }
 0x583   : > { %1128 = vrot.lane.b32.xlu1 %v3589_v59, %s4034_s26  ;;  %s4039_s26 = smov 16  }
 0x588   : > { %1251 = vrot.lane.b32.xlu0 %v3589_v59, %s4035_s29  ;;  %s4040_s29 = smov 8  }
 0x5ba   : > { %v872_v12 = vpop.xlane.xlu0 %871 }
 0x5bb   : > { %3295 = vrcp.f32 %v872_v12 }
 0x5be   : > { %v875_v13 = vpop.xlane.xlu1 %874 }
 0x5bf   : > { %3297 = vrcp.f32 %v875_v13 }
 0x5c2   : > { %v996_v14 = vpop.xlane.xlu0 %995  ;;  %v1006_v23 = vpop.permute.xlu1 %1005 }
 0x5c3   : > { %v1011_v59 = vsel %vm886_vm8, %v1006_v23, 0  ;;  %3299 = vrcp.f32 %v996_v14 }
 0x5c6   : > { %v882_v15 = vpop.permute.xlu0 %881 }
 0x5c7   : > { %v888_v16 = vsel %vm886_vm8, %v882_v15, 0 }
 0x5c8   : > { %3022 = vmatpush3.bf16.msra.mxu0 %v888_v16  ;;  %v3296_v17 = vpop.eup %3295 }
 0x5c9   : > { %3033 = vmatprep.subr.bf16.mxu0 %v3384_v2  ;;  %v878_v20 = vmul.f32 %v3296_v17, %v3634_v43 }
 0x5cc   : > { %v3298_v19 = vpop.eup %3297 }
 0x5cd   : > { %v879_v22 = vmul.f32 %v3298_v19, %v3282_v45 }
 0x5cf   : > { %v880_v24 = vpack.c.bf16 %v879_v22, %v878_v20 }
 0x5d0   : > { %v3300_v30 = vpop.eup %3299 }
 0x5d1   : > { %3024 = vmatmul.mubr.msk.bf16.vlgmr.msra.gmra.mxu0 %vm856_vm6, %v880_v24  ;;  %v1002_v32 = vmul.f32 %v3300_v30, %v3639_v47 }
 0x5d2   : > { %3034 = vmatpush3.bf16.msra.mxu0 %v1011_v59  ;;  %3035 = vmatprep.mubr.msk.bf16.mxu0 %vm3385_vm0, %v3384_v2 }
 0x5d3   : > { %3045 = vmatprep.subr.bf16.mxu0 %v3384_v2 }
 0x5f3   : > { %v999_v25 = vpop.xlane.xlu1 %998 }
 0x5f4   : > { %3301 = vrcp.f32 %v999_v25  ;;  %v2818_v25 = vld [vmem:[%s4023_s9] ss:$0 sm:$0xff] }
 0x5f7   : > { %v1119_v26 = vpop.xlane.xlu0 %1118  ;;  %v1122_v27 = vpop.xlane.xlu1 %1121 }
 0x5f8   : > { %3303 = vrcp.f32 %v1119_v26 }
 0x5f9   : > { %3305 = vrcp.f32 %v1122_v27 }
 0x5fb   : > { %v1242_v28 = vpop.xlane.xlu0 %1241  ;;  %v1245_v29 = vpop.xlane.xlu1 %1244 }
 0x5fc   : > { %3307 = vrcp.f32 %v1242_v28 }
 0x5fd   : > { %3309 = vrcp.f32 %v1245_v29 }
 0x5ff   : > { %v1129_v34 = vpop.permute.xlu1 %1128  ;;  %v1252_v41 = vpop.permute.xlu0 %1251 }
 0x600   : > { %v1134_v38 = vsel %vm886_vm8, %v1129_v34, 0  ;;  %v1257_v45 = vsel %vm886_vm8, %v1252_v41, 0 }
 0x601   : > { %v3302_v31 = vpop.eup %3301 }
 0x602   : > { %v1003_v33 = vmul.f32 %v3302_v31, %v3286_v1 }
 0x604   : > { %v1004_v35 = vpack.c.bf16 %v1003_v33, %v1002_v32 }
 0x605   : > { %v3304_v36 = vpop.eup %3303 }
 0x606   : > { %v3306_v37 = vpop.eup %3305  ;;  %3036 = vmatmul.mubr.msk.bf16.vlgmr.msra.gmra.mxu0 %vm856_vm6, %v1004_v35  ;;  %v1125_v39 = vmul.f32 %v3304_v36, %v3647_v3 }
 0x607   : > { %3046 = vmatpush3.bf16.msra.mxu0 %v1134_v38  ;;  %3047 = vmatprep.mubr.msk.bf16.mxu0 %vm3385_vm0, %v3384_v2  ;;  %v1126_v40 = vmul.f32 %v3306_v37, %v3290_v5 }
 0x608   : > { %3057 = vmatprep.subr.bf16.mxu0 %v3384_v2 }
 0x609   : > { %v3308_v42 = vpop.eup %3307  ;;  %v1127_v43 = vpack.c.bf16 %v1126_v40, %v1125_v39 }
 0x60a   : > { %v3310_v44 = vpop.eup %3309  ;;  %v1248_v46 = vmul.f32 %v3308_v42, %v3650_v6 }
 0x60b   : > { %v1249_v47 = vmul.f32 %v3310_v44, %v3655_v9  ;;  %v3251_v44 = vld [vmem:[%s4026_s12 + $0x8] sm:$0xff]  }
 0x60d   : > { %v1250_v48 = vpack.c.bf16 %v1249_v47, %v1248_v46 }
 0x60e   : > { %3048 = vmatmul.mubr.msk.bf16.vlgmr.msra.gmra.mxu0 %vm856_vm6, %v1127_v43 }
 0x60f   : > { %3058 = vmatpush3.bf16.msra.mxu0 %v1257_v45  ;;  %3059 = vmatprep.mubr.msk.bf16.mxu0 %vm3385_vm0, %v3384_v2  ;;  %v3252_v45 = vld [vmem:[%s4026_s12] sm:$0xff]  }
 0x610   : > { %3071 = vmatprep.subr.bf16.mxu0 %v3384_v2 }
 0x616   : > { %3060 = vmatmul.mubr.msk.bf16.vlgmr.msra.gmra.mxu0 %vm856_vm6, %v1250_v48 }
 0x617   : > { %3075 = vmatprep.mubr.msk.bf16.mxu0 %vm3385_vm0, %v3384_v2  ;;  %3072 = vmatpush3.bf16.msra.mxu0 %v3251_v44 }
 0x618   : > { %3073 = vmatprep.subr.bf16.mxu0 %v3384_v2 }
 0x61b   : > { %3074 = vmatpush3.bf16.msra.mxu0 %v3252_v45 }
 0x61c   : > { %3099 = vmatprep.subr.bf16.mxu0 %v3384_v2 }
 0x691   : > { %v924_v49 = vpop.f32.mrf.mxu0 }
 0x693   : > { %v3025_v50 = vpop.f32.mrf.mxu0 }
 0x695   : > { %v927_v51 = vpop.f32.mrf.mxu0 }
 0x697   : > { %v3026_v52 = vpop.f32.mrf.mxu0 }
 0x6c6   : > { %v1047_v53 = vpop.f32.mrf.mxu0 }
 0x6c8   : > { %v3037_v54 = vpop.f32.mrf.mxu0 }
 0x6c9   : > { %v2822_v54 = vld [vmem:[%s4024_s10] ss:$0 sm:$0xff] }
 0x6ca   : > { %v1050_v55 = vpop.f32.mrf.mxu0 }
 0x6cb   : > { %v3217_v57 = vpack.i.bf16 %v1050_v55, %v1047_v53 }
 0x6cc   : > { %v3038_v58 = vpop.f32.mrf.mxu0 }
 0x6cd   : > { %3218 = vrot.lane.b32.xlu1 %v3217_v57, %s4040_s29  ;;  %v2823_v58 = vld [vmem:[%s4025_s11] ss:$0 sm:$0xff]  ;;  %s4056_s29 = smov 16  }
 0x6ce   : > { %v1170_v60 = vpop.f32.mrf.mxu0 }
 0x6d0   : > { %v3049_v61 = vpop.f32.mrf.mxu0 }
 0x6d2   : > { %v1173_v63 = vpop.f32.mrf.mxu0 }
 0x6d3   : > { %v3222_v0 = vpack.i.bf16 %v1173_v63, %v1170_v60 }
 0x6d4   : > { %v3050_v1 = vpop.f32.mrf.mxu0 }
 0x6d5   : > { %3223 = vrot.lane.b32.xlu0 %v3222_v0, %s4039_s26  ;;  %v3253_v0 = vld [vmem:[%s4028_s14 + $0x38] sm:$0xff]   ;;  %v3254_v1 = vld [vmem:[%s4028_s14 + $0x30] sm:$0xff]  }
 0x6d6   : > { %v1293_v3 = vpop.f32.mrf.mxu0 }
 0x6d8   : > { %v3061_v4 = vpop.f32.mrf.mxu0 }
 0x6d9   : > { %v3256_v4 = vld [vmem:[%s4028_s14 + $0x20] sm:$0xff]  }
 0x6da   : > { %v1296_v5 = vpop.f32.mrf.mxu0 }
 0x6db   : > { %v3227_v6 = vpack.i.bf16 %v1296_v5, %v1293_v3  ;;  %v3255_v3 = vld [vmem:[%s4028_s14 + $0x28] sm:$0xff]   ;;  %v3257_v5 = vld [vmem:[%s4028_s14 + $0x18] sm:$0xff]  }
 0x6dc   : > { %v3062_v7 = vpop.f32.mrf.mxu0 }
 0x6dd   : > { %3228 = vrot.lane.b32.xlu1 %v3227_v6, %s4038_s30  ;;  %v3258_v6 = vld [vmem:[%s4028_s14 + $0x10] sm:$0xff]   ;;  %v3259_v7 = vld [vmem:[%s4028_s14 + $0x8] sm:$0xff]   ;;  %s4055_s30 = smov 8  }
 0x73f   : > { %v3219_v8 = vpop.permute.xlu1 %3218 }
 0x740   : > { %v3221_v10 = vunpack.i.h.bf16 %v3219_v8  ;;  %v3220_v11 = vunpack.i.l.bf16 %v3219_v8  ;;  %v3260_v8 = vld [vmem:[%s4028_s14] sm:$0xff]  }
 0x742   : > { %v1325_v15 = vsel %vm808_vm5, %v927_v51, %v3221_v10  ;;  %v1324_v16 = vsel %vm808_vm5, %v924_v49, %v3220_v11 }
 0x747   : > { %v3224_v9 = vpop.permute.xlu0 %3223 }
 0x748   : > { %v3226_v12 = vunpack.i.h.bf16 %v3224_v9  ;;  %v3225_v13 = vunpack.i.l.bf16 %v3224_v9  ;;  %v2824_v9 = vld [vmem:[%s4027_s13] ss:$0 sm:$0xff] }
 0x74a   : > { %v1327_v20 = vsel %vm1326_vm9, %v1324_v16, %v3225_v13  ;;  %v1328_v22 = vsel %vm1326_vm9, %v1325_v15, %v3226_v12 }
 0x74f   : > { %v3229_v14 = vpop.permute.xlu1 %3228 }
 0x750   : > { %v3231_v17 = vunpack.i.h.bf16 %v3229_v14  ;;  %v3230_v19 = vunpack.i.l.bf16 %v3229_v14 }
 0x752   : > { %v1330_v23 = vsel %vm1329_vm10, %v1327_v20, %v3230_v19  ;;  %v1331_v24 = vsel %vm1329_vm10, %v1328_v22, %v3231_v17 }
 0x753   : > { %v1332_v59 = vpack.c.bf16 %v1331_v24, %v1330_v23 }
 0x755   : > { %3068 = vmatmul.mubr.msk.bf16.vlgmr.msra.gmra.mxu1 %vm691_vm3, %v1332_v59 }
 0x756   : > { %3095 = vmatprep.mubr.msk.bf16.mxu1 %vm3385_vm0, %v3384_v2  ;;  %3080 = vmatpush3.bf16.msra.mxu1 %v3253_v0 }
 0x757   : > { %3081 = vmatprep.subr.bf16.mxu1 %v3384_v2 }
 0x75a   : > { %3082 = vmatpush3.bf16.msra.mxu1 %v3254_v1 }
 0x75b   : > { %3083 = vmatprep.subr.bf16.mxu1 %v3384_v2 }
 0x75e   : > { %3084 = vmatpush3.bf16.msra.mxu1 %v3255_v3 }
 0x75f   : > { %3085 = vmatprep.subr.bf16.mxu1 %v3384_v2 }
 0x762   : > { %3086 = vmatpush3.bf16.msra.mxu1 %v3256_v4 }
 0x763   : > { %3087 = vmatprep.subr.bf16.mxu1 %v3384_v2 }
 0x766   : > { %3088 = vmatpush3.bf16.msra.mxu1 %v3257_v5 }
 0x767   : > { %3089 = vmatprep.subr.bf16.mxu1 %v3384_v2 }
 0x76a   : > { %3090 = vmatpush3.bf16.msra.mxu1 %v3258_v6  ;;  %v2828_v6 = vld [vmem:[%s4029_s15] ss:$0 sm:$0xff] }
 0x76b   : > { %3091 = vmatprep.subr.bf16.mxu1 %v3384_v2 }
 0x76e   : > { %3092 = vmatpush3.bf16.msra.mxu1 %v3259_v7 }
 0x76f   : > { %3093 = vmatprep.subr.bf16.mxu1 %v3384_v2 }
 0x772   : > { %3094 = vmatpush3.bf16.msra.mxu1 %v3260_v8 }
 0x773   : > { %3125 = vmatprep.subr.bf16.mxu1 %v3384_v2 }
 0x815   : > { %v1393_v26 = vpop.f32.mrf.mxu1 }
 0x816   : > { %v1394_v27 = vadd.f32 %v2818_v25, %v1393_v26 }
 0x817   : > { %v3069_v28 = vpop.f32.mrf.mxu1 }
 0x818   : > { %v3714_v29 = vadd.f32 %v1394_v27, %v3557_v18 }
 0x819   : > { %v1396_v30 = vpop.f32.mrf.mxu1 }
 0x81a   : > { %v1397_v31 = vadd.f32 %v2818_v25, %v1396_v30  ;;  %v1404_v32 = vsel %vm691_vm3, %v3714_v29, 0.0 }
 0x81b   : > { %1405 = vadd.xlane.f32.xlu0 %v1404_v32  ;;  %v3070_v33 = vpop.f32.mrf.mxu1 }
 0x81c   : > { %v3719_v34 = vadd.f32 %v1397_v31, %v3561_v21 }
 0x81e   : > { %v1407_v35 = vsel %vm695_vm4, %v3719_v34, 0.0 }
 0x81f   : > { %1408 = vadd.xlane.f32.xlu1 %v1407_v35 }
 0x8a4   : > { %v1406_v36 = vpop.xlane.xlu0 %1405 }
 0x8a5   : > { %v1410_v37 = vmul.f32 0.03125, %v1406_v36 }
 0x8a7   : > { %v1412_v38 = vsub.f32 %v3714_v29, %v1410_v37 }
 0x8a8   : > { %v1409_v18 = vpop.xlane.xlu1 %1408 }
 0x8a9   : > { %v1411_v39 = vmul.f32 0.03125, %v1409_v18  ;;  %v1414_v40 = vmul.f32 %v1412_v38, %v1412_v38 }
 0x8ab   : > { %v1413_v41 = vsub.f32 %v3719_v34, %v1411_v39  ;;  %v1416_v42 = vsel %vm691_vm3, %v1414_v40, 0.0 }
 0x8ac   : > { %1417 = vadd.xlane.f32.xlu0 %v1416_v42 }
 0x8ad   : > { %v1415_v43 = vmul.f32 %v1413_v41, %v1413_v41 }
 0x8af   : > { %v1419_v21 = vsel %vm695_vm4, %v1415_v43, 0.0 }
 0x8b0   : > { %1420 = vadd.xlane.f32.xlu0 %v1419_v21 }
 0x935   : > { %v1418_v46 = vpop.xlane.xlu0 %1417 }
 0x936   : > { %v1422_v47 = vmul.f32 0.03125, %v1418_v46 }
 0x938   : > { %v1424_v48 = vadd.f32 1e-05, %v1422_v47 }
 0x939   : > { %v1421_v49 = vpop.xlane.xlu0 %1420 }
 0x93a   : > { %3311 = vrsqrt.f32 %v1424_v48  ;;  %v1423_v50 = vmul.f32 0.03125, %v1421_v49 }
 0x93c   : > { %v1425_v51 = vadd.f32 1e-05, %v1423_v50 }
 0x93e   : > { %3313 = vrsqrt.f32 %v1425_v51 }
 0x947   : > { %v3312_v52 = vpop.eup %3311 }
 0x948   : > { %v1428_v53 = vmul.f32 %v3312_v52, %v1412_v38 }
 0x94a   : > { %v1436_v57 = vmul.f32 %v2822_v54, %v1428_v53 }
 0x94b   : > { %v3314_v55 = vpop.eup %3313 }
 0x94c   : > { %v1429_v56 = vmul.f32 %v3314_v55, %v1413_v41  ;;  %v1444_v61 = vadd.f32 %v2823_v58, %v1436_v57 }
 0x94e   : > { %v1437_v60 = vmul.f32 %v2822_v54, %v1429_v56 }
 0x950   : > { %v1445_v62 = vadd.f32 %v2823_v58, %v1437_v60 }
 0x952   : > { %v1446_v63 = vpack.c.bf16 %v1445_v62, %v1444_v61 }
 0x954   : > { %3076 = vmatmul.mubr.msk.bf16.vlgmr.msra.gmra.mxu0 %vm691_vm3, %v1446_v63 }
 0x955   : > { %3103 = vmatprep.mubr.msk.bf16.mxu0 %vm3385_vm0, %v3384_v2 }
 0xa14   : > { %v1507_v10 = vpop.f32.mrf.mxu0 }
 0xa15   : > { %v1508_v11 = vadd.f32 %v2824_v9, %v1507_v10 }
 0xa16   : > { %v3077_v12 = vpop.f32.mrf.mxu0 }
 0xa17   : > { %v1516_v13 = vmul.f32 0.70710677, %v1508_v11  ;;  %v1514_v63 = vmul.f32 0.5, %v1508_v11 }
 0xa18   : > { %v1510_v14 = vpop.f32.mrf.mxu0 }
 0xa19   : > { %v1518_v15 = vand.u32 2147483647, %v1516_v13  ;;  %v1511_v16 = vadd.f32 %v2824_v9, %v1510_v14  ;;  %vm1558_vm11 = vcmp.ge.f32.partialorder %v1516_v13, 0.0 }
 0xa1a   : > { %v3078_v17 = vpop.f32.mrf.mxu0 }
 0xa1b   : > { %v1520_v19 = vmul.f32 0.3275911, %v1518_v15  ;;  %v1517_v20 = vmul.f32 0.70710677, %v1511_v16  ;;  %v1546_v25 = vsub.f32 0.0, %v1518_v15  ;;  %v1515_v0 = vmul.f32 0.5, %v1511_v16 }
 0xa1d   : > { %v1522_v22 = vadd.f32 1.0, %v1520_v19  ;;  %v1519_v23 = vand.u32 2147483647, %v1517_v20  ;;  %v1548_v26 = vmul.f32 %v1546_v25, %v1518_v15  ;;  %vm1559_vm12 = vcmp.ge.f32.partialorder %v1517_v20, 0.0 }
 0xa1f   : > { %3315 = vrcp.f32 %v1522_v22  ;;  %v1521_v24 = vmul.f32 0.3275911, %v1519_v23  ;;  %v1547_v27 = vsub.f32 0.0, %v1519_v23  ;;  %v1550_v31 = vmul.f32 1.442695, %v1548_v26  ;;  %v3261_v26 = vld [vmem:[%s4020_s6 + $0x18] sm:$0xff]  }
 0xa20   : > { %3100 = vmatpush3.bf16.msra.mxu0 %v3261_v26 }
 0xa21   : > { %v1523_v59 = vadd.f32 1.0, %v1521_v24  ;;  %v1549_v32 = vmul.f32 %v1547_v27, %v1519_v23  ;;  %v3262_v27 = vld [vmem:[%s4020_s6 + $0x10] sm:$0xff]   ;;  %3101 = vmatprep.subr.bf16.mxu0 %v3384_v2 }
 0xa23   : > { %3317 = vrcp.f32 %v1523_v59  ;;  %v1552_v38 = vmul.f32 1.442695, %v1549_v32 }
 0xa24   : > { %3319 = vpow2.f32 %v1550_v31  ;;  %3102 = vmatpush3.bf16.msra.mxu0 %v3262_v27 }
 0xa25   : > { %3321 = vpow2.f32 %v1552_v38  ;;  %3107 = vmatprep.subr.bf16.mxu0 %v3384_v2  ;;  %v2839_v38 = vld [vmem:[%s4018_s4 + $0x1] ss:$0 sm:$0xff] }
 0xa2c   : > { %v3316_v28 = vpop.eup %3315 }
 0xa2d   : > { %v1528_v30 = vmul.f32 1.0614054, %v3316_v28 }
 0xa2f   : > { %v1530_v33 = vadd.f32 -1.4531521, %v1528_v30 }
 0xa30   : > { %v3318_v35 = vpop.eup %3317 }
 0xa31   : > { %v1532_v36 = vmul.f32 %v3316_v28, %v1530_v33  ;;  %v1529_v37 = vmul.f32 1.0614054, %v3318_v35  ;;  %v3320_v49 = vpop.eup %3319 }
 0xa32   : > { %v3322_v54 = vpop.eup %3321 }
 0xa33   : > { %v1534_v18 = vadd.f32 1.4214138, %v1532_v36  ;;  %v1531_v39 = vadd.f32 -1.4531521, %v1529_v37 }
 0xa35   : > { %v1536_v40 = vmul.f32 %v3316_v28, %v1534_v18  ;;  %v1533_v41 = vmul.f32 %v3318_v35, %v1531_v39 }
 0xa37   : > { %v1538_v42 = vadd.f32 -0.28449672, %v1536_v40  ;;  %v1535_v43 = vadd.f32 1.4214138, %v1533_v41  ;;  %v2840_v41 = vld [vmem:[%s4019_s5 + $0x1] ss:$0 sm:$0xff] }
 0xa39   : > { %v1540_v21 = vmul.f32 %v3316_v28, %v1538_v42  ;;  %v1537_v44 = vmul.f32 %v3318_v35, %v1535_v43 }
 0xa3b   : > { %v1542_v45 = vadd.f32 0.2548296, %v1540_v21  ;;  %v1539_v46 = vadd.f32 -0.28449672, %v1537_v44 }
 0xa3d   : > { %v1544_v47 = vmul.f32 %v3316_v28, %v1542_v45  ;;  %v1541_v48 = vmul.f32 %v3318_v35, %v1539_v46  ;;  %v2846_v46 = vld [vmem:[%s4021_s7 + $0x1] ss:$0 sm:$0xff] }
 0xa3f   : > { %v1554_v50 = vmul.f32 %v3320_v49, %v1544_v47  ;;  %v1543_v51 = vadd.f32 0.2548296, %v1541_v48 }
 0xa41   : > { %v1556_v52 = vsub.f32 1.0, %v1554_v50  ;;  %v1545_v53 = vmul.f32 %v3318_v35, %v1543_v51 }
 0xa43   : > { %v1560_v55 = vsub.f32 0.0, %v1556_v52  ;;  %v1555_v56 = vmul.f32 %v3322_v54, %v1545_v53 }
 0xa45   : > { %v1562_v57 = vsel %vm1558_vm11, %v1556_v52, %v1560_v55  ;;  %v1557_v58 = vsub.f32 1.0, %v1555_v56 }
 0xa46   : > { %v1564_v61 = vadd.f32 1.0, %v1562_v57 }
 0xa47   : > { %v1561_v60 = vsub.f32 0.0, %v1557_v58 }
 0xa48   : > { %v1566_v3 = vmul.f32 %v1564_v61, %v1514_v63 }
 0xa49   : > { %v1563_v62 = vsel %vm1559_vm12, %v1557_v58, %v1561_v60 }
 0xa4a   : > { %v1565_v1 = vadd.f32 1.0, %v1563_v62 }
 0xa4c   : > { %v1567_v4 = vmul.f32 %v1565_v1, %v1515_v0 }
 0xa4e   : > { %v1568_v5 = vpack.c.bf16 %v1567_v4, %v1566_v3 }
 0xa50   : > { %3096 = vmatmul.mubr.bf16.vlgmr.msra.gmra.mxu1 %v1568_v5 }
 0xa51   : > { %3127 = vmatprep.mubr.msk.bf16.mxu1 %vm3385_vm0, %v3384_v2 }
 0xb10   : > { %v1674_v7 = vpop.f32.mrf.mxu1 }
 0xb11   : > { %v1675_v8 = vadd.f32 %v2828_v6, %v1674_v7 }
 0xb12   : > { %v3097_v9 = vpop.f32.mrf.mxu1 }
 0xb13   : > { %v3785_v10 = vadd.f32 %v1675_v8, %v3714_v29 }
 0xb14   : > { %v1677_v11 = vpop.f32.mrf.mxu1 }
 0xb15   : > { %v1678_v12 = vadd.f32 %v2828_v6, %v1677_v11  ;;  %v1687_v13 = vsel %vm691_vm3, %v3785_v10, 0.0 }
 0xb16   : > { %1688 = vadd.xlane.f32.xlu1 %v1687_v13  ;;  %v3098_v14 = vpop.f32.mrf.mxu1 }
 0xb17   : > { %v3790_v15 = vadd.f32 %v1678_v12, %v3719_v34 }
 0xb19   : > { %v1690_v16 = vsel %vm695_vm4, %v3790_v15, 0.0 }
 0xb1a   : > { %1691 = vadd.xlane.f32.xlu0 %v1690_v16 }
 0xb9f   : > { %v1689_v17 = vpop.xlane.xlu1 %1688 }
 0xba0   : > { %v1693_v19 = vmul.f32 0.03125, %v1689_v17 }
 0xba2   : > { %v1695_v20 = vsub.f32 %v3785_v10, %v1693_v19 }
 0xba3   : > { %v1692_v29 = vpop.xlane.xlu0 %1691 }
 0xba4   : > { %v1694_v22 = vmul.f32 0.03125, %v1692_v29  ;;  %v1697_v23 = vmul.f32 %v1695_v20, %v1695_v20 }
 0xba6   : > { %v1696_v24 = vsub.f32 %v3790_v15, %v1694_v22  ;;  %v1699_v59 = vsel %vm691_vm3, %v1697_v23, 0.0 }
 0xba7   : > { %1700 = vadd.xlane.f32.xlu1 %v1699_v59 }
 0xba8   : > { %v1698_v25 = vmul.f32 %v1696_v24, %v1696_v24 }
 0xbaa   : > { %v1702_v34 = vsel %vm695_vm4, %v1698_v25, 0.0 }
 0xbab   : > { %1703 = vadd.xlane.f32.xlu0 %v1702_v34 }
 0xc30   : > { %v1701_v28 = vpop.xlane.xlu1 %1700 }
 0xc31   : > { %v1705_v30 = vmul.f32 0.03125, %v1701_v28 }
 0xc33   : > { %v1707_v31 = vadd.f32 1e-05, %v1705_v30 }
 0xc34   : > { %v1704_v32 = vpop.xlane.xlu0 %1703 }
 0xc35   : > { %3323 = vrsqrt.f32 %v1707_v31  ;;  %v1706_v33 = vmul.f32 0.03125, %v1704_v32 }
 0xc37   : > { %v1708_v35 = vadd.f32 1e-05, %v1706_v33 }
 0xc39   : > { %3325 = vrsqrt.f32 %v1708_v35 }
 0xc42   : > { %v3324_v36 = vpop.eup %3323 }
 0xc43   : > { %v1711_v37 = vmul.f32 %v3324_v36, %v1695_v20 }
 0xc45   : > { %v1719_v40 = vmul.f32 %v2839_v38, %v1711_v37 }
 0xc46   : > { %v3326_v18 = vpop.eup %3325 }
 0xc47   : > { %v1712_v39 = vmul.f32 %v3326_v18, %v1696_v24  ;;  %v1727_v43 = vadd.f32 %v2840_v41, %v1719_v40 }
 0xc49   : > { %v1720_v42 = vmul.f32 %v2839_v38, %v1712_v39 }
 0xc4b   : > { %v1728_v21 = vadd.f32 %v2840_v41, %v1720_v42 }
 0xc4d   : > { %v1729_v44 = vpack.c.bf16 %v1728_v21, %v1727_v43 }
 0xc4f   : > { %3104 = vmatmul.mubr.msk.bf16.vlgmr.msra.gmra.mxu0 %vm691_vm3, %v1729_v44 }
 0xc50   : > { %3109 = vmatprep.mubr.msk.bf16.mxu0 %vm3385_vm0, %v3384_v2 }
 0xd0f   : > { %v1792_v45 = vpop.f32.mrf.mxu0 }
 0xd10   : > { %v1793_v49 = vadd.f32 %v2846_v46, %v1792_v45 }
 0xd11   : > { %v3105_v47 = vpop.f32.mrf.mxu0 }
 0xd13   : > { %v1795_v48 = vpop.f32.mrf.mxu0 }
 0xd14   : > { %v1796_v50 = vadd.f32 %v2846_v46, %v1795_v48 }
 0xd15   : > { %v3106_v51 = vpop.f32.mrf.mxu0 }
 0xd16   : > { %v3818_v52 = vpack.c.bf16 %v1796_v50, %v1793_v49 }
 0xd18   : > { %1801 = vrot.lane.b32.xlu1 %v3818_v52, %s3387_s1  ;;  %s4052_s1 = smov 56  }
 0xd1c   : > { %1873 = vrot.lane.b32.xlu1 %v3818_v52, %s3394_s25 }
 0xd20   : > { %1922 = vrot.lane.b32.xlu1 %v3818_v52, %s3389_s21  ;;  %s4053_s21 = smov 40  }
 0xd24   : > { %2047 = vrot.lane.b32.xlu1 %v3818_v52, %s3390_s2  ;;  %s4054_s2 = smov 48  }
 0xd28   : > { %2045 = vrot.lane.b32.xlu1 %v3818_v52, %s3386_s19  ;;  %s4051_s19 = smov 88  }
 0xd2c   : > { %2170 = vrot.lane.b32.xlu1 %v3818_v52, %s4049_s20  ;;  %s4057_s20 = smov 24  }
 0xd30   : > { %2168 = vrot.lane.b32.xlu1 %v3818_v52, %s4050_s24 }
 0xd8a   : > { %v1802_v53 = vpop.permute.xlu1 %1801 }
 0xd8b   : > { %v1807_v54 = vsel %vm808_vm5, %v1802_v53, 0 }
 0xd8c   : > { %3108 = vmatpush3.bf16.xpose.msra.mxu0 %v1807_v54 }
 0xd8d   : > { %3113 = vmatprep.subr.bf16.mxu0 %v3384_v2 }
 0xd8e   : > { %v1874_v55 = vpop.permute.xlu1 %1873 }
 0xd8f   : > { %v1879_v56 = vsel %vm886_vm8, %v1874_v55, 0 }
 0xd92   : > { %v1923_v17 = vpop.permute.xlu1 %1922 }
 0xd93   : > { %3110 = vmatmul.mubr.msk.bf16.vlgmr.msra.gmra.mxu0 %vm808_vm5, %v3818_v52 }
 0xd94   : > { %3114 = vmatpush3.bf16.msra.mxu0 %v1879_v56  ;;  %3115 = vmatprep.mubr.msk.bf16.mxu0 %vm3385_vm0, %v3384_v2 }
 0xd95   : > { %3119 = vmatprep.subr.bf16.mxu0 %v3384_v2 }
 0xd96   : > { %v2048_v24 = vpop.permute.xlu1 %2047 }
 0xd97   : > { %v2053_v25 = vsel %vm808_vm5, %v2048_v24, 0 }
 0xd9a   : > { %v2046_v59 = vpop.permute.xlu1 %2045 }
 0xd9e   : > { %v2171_v34 = vpop.permute.xlu1 %2170 }
 0xd9f   : > { %v2176_v26 = vsel %vm808_vm5, %v2171_v34, 0 }
 0xda2   : > { %v2169_v27 = vpop.permute.xlu1 %2168 }
 0xe53   : > { %v1843_v57 = vpop.f32.mrf.mxu0 }
 0xe54   : > { %v1850_v58 = vsel %vm856_vm6, %v1843_v57, -inf }
 0xe55   : > { %1851 = vmax.xlane.f32.xlu0 %v1850_v58  ;;  %v3111_v60 = vpop.f32.mrf.mxu0 }
 0xe57   : > { %v1846_v61 = vpop.f32.mrf.mxu0 }
 0xe58   : > { %v1853_v62 = vsel %vm860_vm7, %v1846_v61, -inf }
 0xe59   : > { %1854 = vmax.xlane.f32.xlu0 %v1853_v62  ;;  %v3112_v63 = vpop.f32.mrf.mxu0 }
 0xede   : > { %v1852_v0 = vpop.xlane.xlu0 %1851 }
 0xedf   : > { %v1856_v1 = vsub.f32 %v1843_v57, %v1852_v0 }
 0xee1   : > { %v1858_v3 = vmul.f32 1.442695, %v1856_v1 }
 0xee2   : > { %v1855_v4 = vpop.xlane.xlu0 %1854 }
 0xee3   : > { %3327 = vpow2.f32 %v1858_v3  ;;  %v1857_v5 = vsub.f32 %v1846_v61, %v1855_v4 }
 0xee5   : > { %v1860_v6 = vmul.f32 1.442695, %v1857_v5 }
 0xee7   : > { %3329 = vpow2.f32 %v1860_v6 }
 0xef0   : > { %v3328_v7 = vpop.eup %3327 }
 0xef1   : > { %v1862_v8 = vsel %vm856_vm6, %v3328_v7, 0.0 }
 0xef2   : > { %1863 = vadd.xlane.f32.xlu0 %v1862_v8 }
 0xef4   : > { %v3330_v9 = vpop.eup %3329 }
 0xef5   : > { %v1865_v11 = vsel %vm860_vm7, %v3330_v9, 0.0 }
 0xef6   : > { %1866 = vadd.xlane.f32.xlu0 %v1865_v11 }
 0xf0c   : > { %1924 = vrot.lane.b32.xlu0 %v3818_v52, %s4051_s19  ;;  %s589_s19 = scalar_lea.vmem %s4032_s18, %s2910_s23 }
 0xf7b   : > { %v1864_v12 = vpop.xlane.xlu0 %1863 }
 0xf7c   : > { %3331 = vrcp.f32 %v1864_v12 }
 0xf7f   : > { %v1867_v13 = vpop.xlane.xlu0 %1866 }
 0xf80   : > { %3333 = vrcp.f32 %v1867_v13 }
 0xf83   : > { %v1925_v29 = vpop.permute.xlu0 %1924 }
 0xf84   : > { %v1930_v23 = vsel %vm808_vm5, %v1925_v29, 0 }
 0xf89   : > { %v3332_v14 = vpop.eup %3331 }
 0xf8a   : > { %v1870_v19 = vmul.f32 %v3332_v14, %v3328_v7 }
 0xf8d   : > { %v3334_v16 = vpop.eup %3333 }
 0xf8e   : > { %v1871_v20 = vmul.f32 %v3334_v16, %v3330_v9 }
 0xf90   : > { %v1872_v22 = vpack.c.bf16 %v1871_v20, %v1870_v19 }
 0xf92   : > { %3116 = vmatmul.mubr.msk.bf16.vlgmr.msra.gmra.mxu0 %vm856_vm6, %v1872_v22 }
 0xf93   : > { %3120 = vmatpush3.bf16.xpose.msra.mxu0 %v1930_v23  ;;  %3121 = vmatprep.mubr.msk.bf16.mxu0 %vm3385_vm0, %v3384_v2 }
 0xf94   : > { %3131 = vmatprep.subr.bf16.mxu0 %v3384_v2 }
 0xf9a   : > { %3122 = vmatmul.mubr.msk.bf16.vlgmr.msra.gmra.mxu0 %vm808_vm5, %v1923_v17 }
 0xf9b   : > { %3132 = vmatpush3.bf16.xpose.msra.mxu0 %v2053_v25  ;;  %3133 = vmatprep.mubr.msk.bf16.mxu0 %vm3385_vm0, %v3384_v2 }
 0xf9c   : > { %3143 = vmatprep.subr.bf16.mxu0 %v3384_v2 }
 0xfa2   : > { %3134 = vmatmul.mubr.msk.bf16.vlgmr.msra.gmra.mxu0 %vm808_vm5, %v2046_v59 }
 0xfa3   : > { %3144 = vmatpush3.bf16.xpose.msra.mxu0 %v2176_v26  ;;  %3145 = vmatprep.mubr.msk.bf16.mxu0 %vm3385_vm0, %v3384_v2 }
 0xfa4   : > { %3155 = vmatprep.subr.bf16.mxu0 %v3384_v2 }
 0xfaa   : > { %3146 = vmatmul.mubr.msk.bf16.vlgmr.msra.gmra.mxu0 %vm808_vm5, %v2169_v27 }
 0xfab   : > { %3159 = vmatprep.mubr.msk.bf16.mxu0 %vm3385_vm0, %v3384_v2 }
0x1052   : > { %v3866_v28 = vpop.f32.mrf.mxu0 }
0x1054   : > { %v3117_v30 = vpop.f32.mrf.mxu0 }
0x1056   : > { %v3868_v31 = vpop.f32.mrf.mxu0 }
0x1058   : > { %v3118_v32 = vpop.f32.mrf.mxu0 }
0x105a   : > { %v1966_v33 = vpop.f32.mrf.mxu0 }
0x105b   : > { %v1973_v35 = vsel %vm856_vm6, %v1966_v33, -inf }
0x105c   : > { %1974 = vmax.xlane.f32.xlu0 %v1973_v35  ;;  %v3123_v36 = vpop.f32.mrf.mxu0 }
0x105e   : > { %v1969_v37 = vpop.f32.mrf.mxu0 }
0x105f   : > { %v1976_v38 = vsel %vm860_vm7, %v1969_v37, -inf }
0x1060   : > { %1977 = vmax.xlane.f32.xlu1 %v1976_v38  ;;  %v3124_v18 = vpop.f32.mrf.mxu0 }
0x1062   : > { %v2089_v39 = vpop.f32.mrf.mxu0 }
0x1063   : > { %v2096_v40 = vsel %vm856_vm6, %v2089_v39, -inf }
0x1064   : > { %2097 = vmax.xlane.f32.xlu0 %v2096_v40  ;;  %v3135_v41 = vpop.f32.mrf.mxu0 }
0x1066   : > { %v2092_v42 = vpop.f32.mrf.mxu0 }
0x1067   : > { %v2099_v43 = vsel %vm860_vm7, %v2092_v42, -inf }
0x1068   : > { %2100 = vmax.xlane.f32.xlu0 %v2099_v43  ;;  %v3136_v21 = vpop.f32.mrf.mxu0 }
0x106a   : > { %v2212_v44 = vpop.f32.mrf.mxu0 }
0x106b   : > { %v2219_v45 = vsel %vm856_vm6, %v2212_v44, -inf }
0x106c   : > { %2220 = vmax.xlane.f32.xlu1 %v2219_v45  ;;  %v3147_v46 = vpop.f32.mrf.mxu0 }
0x106e   : > { %v2215_v47 = vpop.f32.mrf.mxu0 }
0x106f   : > { %v2222_v48 = vsel %vm860_vm7, %v2215_v47, -inf }
0x1070   : > { %2223 = vmax.xlane.f32.xlu0 %v2222_v48  ;;  %v3148_v49 = vpop.f32.mrf.mxu0 }
0x107d   : > { %1996 = vrot.lane.b32.xlu1 %v3818_v52, %s4052_s1 }
0x10e5   : > { %v1975_v50 = vpop.xlane.xlu0 %1974 }
0x10e6   : > { %v1979_v51 = vsub.f32 %v1966_v33, %v1975_v50 }
0x10e8   : > { %v1981_v53 = vmul.f32 1.442695, %v1979_v51  ;;  %v3263_v51 = vld [vmem:[%s4022_s8 + $0x18] sm:$0xff]  }
0x10e9   : > { %v1978_v54 = vpop.xlane.xlu1 %1977  ;;  %3156 = vmatpush3.bf16.msra.mxu0 %v3263_v51 }
0x10ea   : > { %3335 = vpow2.f32 %v1981_v53  ;;  %v1980_v55 = vsub.f32 %v1969_v37, %v1978_v54  ;;  %3157 = vmatprep.subr.bf16.mxu0 %v3384_v2 }
0x10ec   : > { %v1983_v56 = vmul.f32 1.442695, %v1980_v55 }
0x10ed   : > { %v2098_v57 = vpop.xlane.xlu0 %2097 }
0x10ee   : > { %3337 = vpow2.f32 %v1983_v56  ;;  %v2102_v58 = vsub.f32 %v2089_v39, %v2098_v57  ;;  %v3264_v57 = vld [vmem:[%s4022_s8 + $0x10] sm:$0xff]  }
0x10ef   : > { %3158 = vmatpush3.bf16.msra.mxu0 %v3264_v57 }
0x10f0   : > { %v2104_v60 = vmul.f32 1.442695, %v2102_v58  ;;  %3171 = vmatprep.subr.bf16.mxu0 %v3384_v2 }
0x10f1   : > { %v2101_v61 = vpop.xlane.xlu0 %2100 }
0x10f2   : > { %3339 = vpow2.f32 %v2104_v60  ;;  %v2103_v62 = vsub.f32 %v2092_v42, %v2101_v61 }
0x10f4   : > { %v2106_v63 = vmul.f32 1.442695, %v2103_v62 }
0x10f5   : > { %v2221_v0 = vpop.xlane.xlu1 %2220 }
0x10f6   : > { %3341 = vpow2.f32 %v2106_v63  ;;  %v2225_v1 = vsub.f32 %v2212_v44, %v2221_v0 }
0x10f7   : > { %v3336_v3 = vpop.eup %3335 }
0x10f8   : > { %v2227_v4 = vmul.f32 1.442695, %v2225_v1  ;;  %v1985_v5 = vsel %vm856_vm6, %v3336_v3, 0.0 }
0x10f9   : > { %1986 = vadd.xlane.f32.xlu1 %v1985_v5  ;;  %v1997_v6 = vpop.permute.xlu1 %1996  ;;  %v2224_v7 = vpop.xlane.xlu0 %2223 }
0x10fa   : > { %3343 = vpow2.f32 %v2227_v4  ;;  %v2002_v8 = vsel %vm886_vm8, %v1997_v6, 0  ;;  %v2226_v9 = vsub.f32 %v2215_v47, %v2224_v7 }
0x10fb   : > { %v3338_v11 = vpop.eup %3337  ;;  %3126 = vmatpush3.bf16.msra.mxu1 %v2002_v8 }
0x10fc   : > { %v2229_v12 = vmul.f32 1.442695, %v2226_v9  ;;  %v1988_v13 = vsel %vm860_vm7, %v3338_v11, 0.0  ;;  %3137 = vmatprep.subr.bf16.mxu1 %v3384_v2 }
0x10fd   : > { %1989 = vadd.xlane.f32.xlu0 %v1988_v13 }
0x10fe   : > { %3345 = vpow2.f32 %v2229_v12 }
0x10ff   : > { %v3340_v14 = vpop.eup %3339 }
0x1100   : > { %v2108_v16 = vsel %vm856_vm6, %v3340_v14, 0.0 }
0x1101   : > { %2109 = vadd.xlane.f32.xlu1 %v2108_v16 }
0x1103   : > { %v3342_v17 = vpop.eup %3341 }
0x1104   : > { %v2111_v19 = vsel %vm860_vm7, %v3342_v17, 0.0 }
0x1105   : > { %2112 = vadd.xlane.f32.xlu0 %v2111_v19 }
0x1107   : > { %v3344_v20 = vpop.eup %3343 }
0x1108   : > { %v2231_v29 = vsel %vm856_vm6, %v3344_v20, 0.0 }
0x1109   : > { %2232 = vadd.xlane.f32.xlu1 %v2231_v29 }
0x110b   : > { %v3346_v22 = vpop.eup %3345 }
0x110c   : > { %v2234_v23 = vsel %vm860_vm7, %v3346_v22, 0.0 }
0x110d   : > { %2235 = vadd.xlane.f32.xlu0 %v2234_v23 }
0x111a   : > { %2242 = vrot.lane.b32.xlu1 %v3818_v52, %s4053_s21 }
0x1123   : > { %2119 = vrot.lane.b32.xlu0 %v3818_v52, %s4054_s2 }
0x1182   : > { %v1987_v24 = vpop.xlane.xlu1 %1986 }
0x1183   : > { %3347 = vrcp.f32 %v1987_v24 }
0x1186   : > { %v1990_v59 = vpop.xlane.xlu0 %1989 }
0x1187   : > { %3349 = vrcp.f32 %v1990_v59 }
0x118a   : > { %v2110_v25 = vpop.xlane.xlu1 %2109 }
0x118b   : > { %3351 = vrcp.f32 %v2110_v25 }
0x118e   : > { %v2113_v34 = vpop.xlane.xlu0 %2112 }
0x118f   : > { %3353 = vrcp.f32 %v2113_v34 }
0x1190   : > { %v3348_v26 = vpop.eup %3347 }
0x1191   : > { %v1993_v32 = vmul.f32 %v3348_v26, %v3336_v3 }
0x1192   : > { %v2233_v27 = vpop.xlane.xlu1 %2232 }
0x1193   : > { %3355 = vrcp.f32 %v2233_v27 }
0x1194   : > { %v3350_v30 = vpop.eup %3349 }
0x1195   : > { %v1994_v33 = vmul.f32 %v3350_v30, %v3338_v11 }
0x1196   : > { %v2236_v35 = vpop.xlane.xlu0 %2235  ;;  %v2243_v41 = vpop.permute.xlu1 %2242 }
0x1197   : > { %3357 = vrcp.f32 %v2236_v35  ;;  %v1995_v36 = vpack.c.bf16 %v1994_v33, %v1993_v32  ;;  %v2248_v43 = vsel %vm886_vm8, %v2243_v41, 0  ;;  %v3266_v41 = vld [vmem:[%s4026_s12 + $0x10] sm:$0xff]  }
0x1198   : > { %v3352_v52 = vpop.eup %3351 }
0x1199   : > { %3128 = vmatmul.mubr.msk.bf16.vlgmr.msra.gmra.mxu1 %vm856_vm6, %v1995_v36  ;;  %v2116_v39 = vmul.f32 %v3352_v52, %v3340_v14 }
0x119a   : > { %v2120_v37 = vpop.permute.xlu0 %2119  ;;  %3139 = vmatprep.mubr.msk.bf16.mxu1 %vm3385_vm0, %v3384_v2 }
0x119b   : > { %v2125_v38 = vsel %vm886_vm8, %v2120_v37, 0 }
0x119c   : > { %v3354_v18 = vpop.eup %3353  ;;  %3138 = vmatpush3.bf16.msra.mxu1 %v2125_v38 }
0x119d   : > { %3149 = vmatprep.subr.bf16.mxu1 %v3384_v2  ;;  %v2117_v40 = vmul.f32 %v3354_v18, %v3342_v17 }
0x119f   : > { %v2118_v42 = vpack.c.bf16 %v2117_v40, %v2116_v39  ;;  %v3265_v40 = vld [vmem:[%s4026_s12 + $0x18] sm:$0xff]  }
0x11a0   : > { %v3356_v21 = vpop.eup %3355 }
0x11a1   : > { %3140 = vmatmul.mubr.msk.bf16.vlgmr.msra.gmra.mxu1 %vm856_vm6, %v2118_v42  ;;  %v2239_v45 = vmul.f32 %v3356_v21, %v3344_v20 }
0x11a2   : > { %3150 = vmatpush3.bf16.msra.mxu1 %v2248_v43  ;;  %3151 = vmatprep.mubr.msk.bf16.mxu1 %vm3385_vm0, %v3384_v2 }
0x11a3   : > { %3163 = vmatprep.subr.bf16.mxu1 %v3384_v2 }
0x11a4   : > { %v3358_v44 = vpop.eup %3357 }
0x11a5   : > { %v2240_v46 = vmul.f32 %v3358_v44, %v3346_v22 }
0x11a7   : > { %v2241_v47 = vpack.c.bf16 %v2240_v46, %v2239_v45 }
0x11a9   : > { %3152 = vmatmul.mubr.msk.bf16.vlgmr.msra.gmra.mxu1 %vm856_vm6, %v2241_v47 }
0x11aa   : > { %3167 = vmatprep.mubr.msk.bf16.mxu1 %vm3385_vm0, %v3384_v2  ;;  %3164 = vmatpush3.bf16.msra.mxu1 %v3265_v40 }
0x11ab   : > { %3165 = vmatprep.subr.bf16.mxu1 %v3384_v2 }
0x11ae   : > { %3166 = vmatpush3.bf16.msra.mxu1 %v3266_v41 }
0x1259   : > { %v2038_v48 = vpop.f32.mrf.mxu1 }
0x125b   : > { %v3129_v49 = vpop.f32.mrf.mxu1 }
0x125c   : > { %v2869_v49 = vld [vmem:[%s4024_s10 + $0x1] ss:$0 sm:$0xff] }
0x125d   : > { %v2041_v50 = vpop.f32.mrf.mxu1 }
0x125e   : > { %v3232_v53 = vpack.i.bf16 %v2041_v50, %v2038_v48 }
0x125f   : > { %v3130_v54 = vpop.f32.mrf.mxu1 }
0x1260   : > { %3233 = vrot.lane.b32.xlu1 %v3232_v53, %s4055_s30  ;;  %v2870_v54 = vld [vmem:[%s4025_s11 + $0x1] ss:$0 sm:$0xff] }
0x1261   : > { %v2161_v55 = vpop.f32.mrf.mxu1 }
0x1263   : > { %v3141_v56 = vpop.f32.mrf.mxu1 }
0x1265   : > { %v2164_v58 = vpop.f32.mrf.mxu1 }
0x1266   : > { %v3237_v60 = vpack.i.bf16 %v2164_v58, %v2161_v55 }
0x1267   : > { %v3142_v61 = vpop.f32.mrf.mxu1 }
0x1268   : > { %3238 = vrot.lane.b32.xlu0 %v3237_v60, %s4056_s29  ;;  %v3267_v60 = vld [vmem:[%s4028_s14 + $0x78] sm:$0xff]   ;;  %v3268_v61 = vld [vmem:[%s4028_s14 + $0x70] sm:$0xff]  }
0x1269   : > { %v2284_v62 = vpop.f32.mrf.mxu1 }
0x126b   : > { %v3153_v63 = vpop.f32.mrf.mxu1 }
0x126c   : > { %v3270_v63 = vld [vmem:[%s4028_s14 + $0x60] sm:$0xff]  }
0x126d   : > { %v2287_v0 = vpop.f32.mrf.mxu1 }
0x126e   : > { %v3242_v1 = vpack.i.bf16 %v2287_v0, %v2284_v62  ;;  %v3269_v62 = vld [vmem:[%s4028_s14 + $0x68] sm:$0xff]   ;;  %v3271_v0 = vld [vmem:[%s4028_s14 + $0x58] sm:$0xff]  }
0x126f   : > { %v3154_v3 = vpop.f32.mrf.mxu1 }
0x1270   : > { %3243 = vrot.lane.b32.xlu1 %v3242_v1, %s4057_s20  ;;  %v3272_v1 = vld [vmem:[%s4028_s14 + $0x50] sm:$0xff]   ;;  %v3273_v3 = vld [vmem:[%s4028_s14 + $0x48] sm:$0xff]  }
0x12d2   : > { %v3234_v4 = vpop.permute.xlu1 %3233 }
0x12d3   : > { %v3236_v6 = vunpack.i.h.bf16 %v3234_v4  ;;  %v3235_v7 = vunpack.i.l.bf16 %v3234_v4  ;;  %v3274_v4 = vld [vmem:[%s4028_s14 + $0x40] sm:$0xff]  }
0x12d5   : > { %v2316_v12 = vsel %vm808_vm5, %v3868_v31, %v3236_v6  ;;  %v2315_v13 = vsel %vm808_vm5, %v3866_v28, %v3235_v7  ;;  %v2863_v28 = vld [vmem:[%s4023_s9 + $0x1] ss:$0 sm:$0xff] }
0x12da   : > { %v3239_v5 = vpop.permute.xlu0 %3238 }
0x12db   : > { %v3241_v8 = vunpack.i.h.bf16 %v3239_v5  ;;  %v3240_v9 = vunpack.i.l.bf16 %v3239_v5  ;;  %v2876_v5 = vld [vmem:[%s4027_s13 + $0x1] ss:$0 sm:$0xff] }
0x12dd   : > { %v2318_v17 = vsel %vm1326_vm9, %v2316_v12, %v3241_v8  ;;  %v2317_v19 = vsel %vm1326_vm9, %v2315_v13, %v3240_v9 }
0x12e2   : > { %v3244_v11 = vpop.permute.xlu1 %3243 }
0x12e3   : > { %v3246_v14 = vunpack.i.h.bf16 %v3244_v11  ;;  %v3245_v16 = vunpack.i.l.bf16 %v3244_v11 }
0x12e5   : > { %v2320_v20 = vsel %vm1329_vm10, %v2318_v17, %v3246_v14  ;;  %v2319_v29 = vsel %vm1329_vm10, %v2317_v19, %v3245_v16 }
0x12e6   : > { %v2321_v22 = vpack.c.bf16 %v2320_v20, %v2319_v29 }
0x12e8   : > { %3160 = vmatmul.mubr.msk.bf16.vlgmr.msra.gmra.mxu0 %vm691_vm3, %v2321_v22 }
0x12e9   : > { %3187 = vmatprep.mubr.msk.bf16.mxu0 %vm3385_vm0, %v3384_v2  ;;  %3172 = vmatpush3.bf16.msra.mxu0 %v3267_v60 }
0x12ea   : > { %3173 = vmatprep.subr.bf16.mxu0 %v3384_v2 }
0x12ed   : > { %3174 = vmatpush3.bf16.msra.mxu0 %v3268_v61 }
0x12ee   : > { %3175 = vmatprep.subr.bf16.mxu0 %v3384_v2 }
0x12f1   : > { %3176 = vmatpush3.bf16.msra.mxu0 %v3269_v62 }
0x12f2   : > { %3177 = vmatprep.subr.bf16.mxu0 %v3384_v2 }
0x12f5   : > { %3178 = vmatpush3.bf16.msra.mxu0 %v3270_v63 }
0x12f6   : > { %3179 = vmatprep.subr.bf16.mxu0 %v3384_v2 }
0x12f9   : > { %3180 = vmatpush3.bf16.msra.mxu0 %v3271_v0  ;;  %v2897_v0 = vld [vmem:[%s4029_s15 + $0x1] ss:$0 sm:$0xff] }
0x12fa   : > { %3181 = vmatprep.subr.bf16.mxu0 %v3384_v2 }
0x12fd   : > { %3182 = vmatpush3.bf16.msra.mxu0 %v3272_v1 }
0x12fe   : > { %3183 = vmatprep.subr.bf16.mxu0 %v3384_v2 }
0x1301   : > { %3184 = vmatpush3.bf16.msra.mxu0 %v3273_v3 }
0x1302   : > { %3185 = vmatprep.subr.bf16.mxu0 %v3384_v2 }
0x1305   : > { %3186 = vmatpush3.bf16.msra.mxu0 %v3274_v4 }
0x13a8   : > { %v2384_v31 = vpop.f32.mrf.mxu0 }
0x13a9   : > { %v2385_v23 = vadd.f32 %v2863_v28, %v2384_v31 }
0x13aa   : > { %v3161_v24 = vpop.f32.mrf.mxu0 }
0x13ab   : > { %v3929_v59 = vadd.f32 %v2385_v23, %v3785_v10 }
0x13ac   : > { %v2387_v25 = vpop.f32.mrf.mxu0 }
0x13ad   : > { %v2388_v34 = vadd.f32 %v2863_v28, %v2387_v25  ;;  %v2397_v26 = vsel %vm691_vm3, %v3929_v59, 0.0 }
0x13ae   : > { %2398 = vadd.xlane.f32.xlu0 %v2397_v26  ;;  %v3162_v27 = vpop.f32.mrf.mxu0 }
0x13af   : > { %v3934_v30 = vadd.f32 %v2388_v34, %v3790_v15 }
0x13b1   : > { %v2400_v32 = vsel %vm695_vm4, %v3934_v30, 0.0 }
0x13b2   : > { %2401 = vadd.xlane.f32.xlu1 %v2400_v32 }
0x1437   : > { %v2399_v33 = vpop.xlane.xlu0 %2398 }
0x1438   : > { %v2403_v35 = vmul.f32 0.03125, %v2399_v33 }
0x143a   : > { %v2405_v36 = vsub.f32 %v3929_v59, %v2403_v35 }
0x143b   : > { %v2402_v10 = vpop.xlane.xlu1 %2401 }
0x143c   : > { %v2404_v52 = vmul.f32 0.03125, %v2402_v10  ;;  %v2407_v37 = vmul.f32 %v2405_v36, %v2405_v36 }
0x143e   : > { %v2406_v38 = vsub.f32 %v3934_v30, %v2404_v52  ;;  %v2409_v18 = vsel %vm691_vm3, %v2407_v37, 0.0 }
0x143f   : > { %2410 = vadd.xlane.f32.xlu0 %v2409_v18 }
0x1440   : > { %v2408_v39 = vmul.f32 %v2406_v38, %v2406_v38 }
0x1442   : > { %v2412_v15 = vsel %vm695_vm4, %v2408_v39, 0.0 }
0x1443   : > { %2413 = vadd.xlane.f32.xlu0 %v2412_v15 }
0x14c8   : > { %v2411_v42 = vpop.xlane.xlu0 %2410 }
0x14c9   : > { %v2415_v43 = vmul.f32 0.03125, %v2411_v42 }
0x14cb   : > { %v2417_v21 = vadd.f32 1e-05, %v2415_v43 }
0x14cc   : > { %v2414_v44 = vpop.xlane.xlu0 %2413 }
0x14cd   : > { %3359 = vrsqrt.f32 %v2417_v21  ;;  %v2416_v45 = vmul.f32 0.03125, %v2414_v44 }
0x14cf   : > { %v2418_v46 = vadd.f32 1e-05, %v2416_v45 }
0x14d1   : > { %3361 = vrsqrt.f32 %v2418_v46 }
0x14da   : > { %v3360_v47 = vpop.eup %3359 }
0x14db   : > { %v2421_v48 = vmul.f32 %v3360_v47, %v2405_v36 }
0x14dd   : > { %v2429_v53 = vmul.f32 %v2869_v49, %v2421_v48 }
0x14de   : > { %v3362_v50 = vpop.eup %3361 }
0x14df   : > { %v2422_v51 = vmul.f32 %v3362_v50, %v2406_v38  ;;  %v2437_v56 = vadd.f32 %v2870_v54, %v2429_v53 }
0x14e1   : > { %v2430_v55 = vmul.f32 %v2869_v49, %v2422_v51 }
0x14e3   : > { %v2438_v57 = vadd.f32 %v2870_v54, %v2430_v55 }
0x14e5   : > { %v2439_v58 = vpack.c.bf16 %v2438_v57, %v2437_v56 }
0x14e7   : > { %3168 = vmatmul.mubr.msk.bf16.vlgmr.msra.gmra.mxu1 %vm691_vm3, %v2439_v58 }
0x15a7   : > { %v2502_v6 = vpop.f32.mrf.mxu1 }
0x15a8   : > { %v2503_v7 = vadd.f32 %v2876_v5, %v2502_v6 }
0x15a9   : > { %v3169_v8 = vpop.f32.mrf.mxu1 }
0x15aa   : > { %v2511_v9 = vmul.f32 0.70710677, %v2503_v7  ;;  %v2509_v57 = vmul.f32 0.5, %v2503_v7 }
0x15ab   : > { %v2505_v11 = vpop.f32.mrf.mxu1 }
0x15ac   : > { %v2513_v12 = vand.u32 2147483647, %v2511_v9  ;;  %v2506_v13 = vadd.f32 %v2876_v5, %v2505_v11  ;;  %vm2553_vm13 = vcmp.ge.f32.partialorder %v2511_v9, 0.0 }
0x15ad   : > { %v3170_v14 = vpop.f32.mrf.mxu1 }
0x15ae   : > { %v2515_v16 = vmul.f32 0.3275911, %v2513_v12  ;;  %v2512_v17 = vmul.f32 0.70710677, %v2506_v13  ;;  %v2541_v22 = vsub.f32 0.0, %v2513_v12  ;;  %v2510_v58 = vmul.f32 0.5, %v2506_v13 }
0x15b0   : > { %v2517_v2 = vadd.f32 1.0, %v2515_v16  ;;  %v2514_v19 = vand.u32 2147483647, %v2512_v17  ;;  %v2543_v28 = vmul.f32 %v2541_v22, %v2513_v12  ;;  %vm2554_vm14 = vcmp.ge.f32.partialorder %v2512_v17, 0.0 }
0x15b2   : > { %3363 = vrcp.f32 %v2517_v2  ;;  %v2516_v20 = vmul.f32 0.3275911, %v2514_v19  ;;  %v2542_v31 = vsub.f32 0.0, %v2514_v19  ;;  %v2545_v25 = vmul.f32 1.442695, %v2543_v28 }
0x15b4   : > { %v2518_v29 = vadd.f32 1.0, %v2516_v20  ;;  %v2544_v34 = vmul.f32 %v2542_v31, %v2514_v19 }
0x15b6   : > { %3365 = vrcp.f32 %v2518_v29  ;;  %v2547_v35 = vmul.f32 1.442695, %v2544_v34 }
0x15b7   : > { %3367 = vpow2.f32 %v2545_v25 }
0x15b8   : > { %3369 = vpow2.f32 %v2547_v35 }
0x15bf   : > { %v3364_v23 = vpop.eup %3363 }
0x15c0   : > { %v2523_v24 = vmul.f32 1.0614054, %v3364_v23 }
0x15c2   : > { %v2525_v26 = vadd.f32 -1.4531521, %v2523_v24 }
0x15c3   : > { %v3366_v27 = vpop.eup %3365 }
0x15c4   : > { %v2527_v32 = vmul.f32 %v3364_v23, %v2525_v26  ;;  %v2524_v33 = vmul.f32 1.0614054, %v3366_v27  ;;  %v3368_v21 = vpop.eup %3367  ;;  %v2906_v26 = vld [vmem:[%s4030_s16] ss:$0 sm:$0xff] }
0x15c5   : > { %v3370_v48 = vpop.eup %3369 }
0x15c6   : > { %v2529_v36 = vadd.f32 1.4214138, %v2527_v32  ;;  %v2526_v10 = vadd.f32 -1.4531521, %v2524_v33  ;;  %v2907_v32 = vld [vmem:[%s4031_s17] ss:$0 sm:$0xff] }
0x15c8   : > { %v2531_v52 = vmul.f32 %v3364_v23, %v2529_v36  ;;  %v2528_v37 = vmul.f32 %v3366_v27, %v2526_v10 }
0x15ca   : > { %v2533_v38 = vadd.f32 -0.28449672, %v2531_v52  ;;  %v2530_v18 = vadd.f32 1.4214138, %v2528_v37 }
0x15cc   : > { %v2535_v39 = vmul.f32 %v3364_v23, %v2533_v38  ;;  %v2532_v15 = vmul.f32 %v3366_v27, %v2530_v18 }
0x15ce   : > { %v2537_v40 = vadd.f32 0.2548296, %v2535_v39  ;;  %v2534_v41 = vadd.f32 -0.28449672, %v2532_v15 }
0x15d0   : > { %v2539_v42 = vmul.f32 %v3364_v23, %v2537_v40  ;;  %v2536_v43 = vmul.f32 %v3366_v27, %v2534_v41 }
0x15d2   : > { %v2549_v44 = vmul.f32 %v3368_v21, %v2539_v42  ;;  %v2538_v45 = vadd.f32 0.2548296, %v2536_v43 }
0x15d4   : > { %v2551_v46 = vsub.f32 1.0, %v2549_v44  ;;  %v2540_v47 = vmul.f32 %v3366_v27, %v2538_v45 }
0x15d6   : > { %v2555_v49 = vsub.f32 0.0, %v2551_v46  ;;  %v2550_v50 = vmul.f32 %v3370_v48, %v2540_v47 }
0x15d8   : > { %v2557_v51 = vsel %vm2553_vm13, %v2551_v46, %v2555_v49  ;;  %v2552_v53 = vsub.f32 1.0, %v2550_v50 }
0x15d9   : > { %v2559_v55 = vadd.f32 1.0, %v2557_v51 }
0x15da   : > { %v2556_v54 = vsub.f32 0.0, %v2552_v53 }
0x15db   : > { %v2561_v61 = vmul.f32 %v2559_v55, %v2509_v57 }
0x15dc   : > { %v2558_v56 = vsel %vm2554_vm14, %v2552_v53, %v2556_v54 }
0x15dd   : > { %v2560_v60 = vadd.f32 1.0, %v2558_v56 }
0x15df   : > { %v2562_v62 = vmul.f32 %v2560_v60, %v2510_v58 }
0x15e1   : > { %v2563_v63 = vpack.c.bf16 %v2562_v62, %v2561_v61 }
0x15e3   : > { %3188 = vmatmul.mubr.bf16.vlgmr.msra.gmra.mxu0 %v2563_v63 }
0x16a3   : > { %v2671_v1 = vpop.f32.mrf.mxu0 }
0x16a4   : > { %v2672_v3 = vadd.f32 %v2897_v0, %v2671_v1 }
0x16a5   : > { %v3189_v4 = vpop.f32.mrf.mxu0 }
0x16a6   : > { %v2678_v5 = vadd.f32 %v2672_v3, %v3929_v59 }
0x16a7   : > { %v2674_v6 = vpop.f32.mrf.mxu0 }
0x16a8   : > { %v2675_v8 = vadd.f32 %v2897_v0, %v2674_v6  ;;  %v2682_v9 = vsel %vm691_vm3, %v2678_v5, 0.0 }
0x16a9   : > { %2683 = vadd.xlane.f32.xlu1 %v2682_v9  ;;  %v3190_v7 = vpop.f32.mrf.mxu0 }
0x16aa   : > { %v2679_v11 = vadd.f32 %v2675_v8, %v3934_v30 }
0x16ac   : > { %v2685_v12 = vsel %vm695_vm4, %v2679_v11, 0.0 }
0x16ad   : > { %2686 = vadd.xlane.f32.xlu0 %v2685_v12 }
0x1732   : > { %v2684_v13 = vpop.xlane.xlu1 %2683 }
0x1733   : > { %v2688_v14 = vmul.f32 0.03125, %v2684_v13 }
0x1735   : > { %v2690_v16 = vsub.f32 %v2678_v5, %v2688_v14 }
0x1736   : > { %v2687_v17 = vpop.xlane.xlu0 %2686 }
0x1737   : > { %v2689_v2 = vmul.f32 0.03125, %v2687_v17  ;;  %v2692_v19 = vmul.f32 %v2690_v16, %v2690_v16 }
0x1739   : > { %v2691_v20 = vsub.f32 %v2679_v11, %v2689_v2  ;;  %v2694_v59 = vsel %vm691_vm3, %v2692_v19, 0.0 }
0x173a   : > { %2695 = vadd.xlane.f32.xlu1 %v2694_v59 }
0x173b   : > { %v2693_v29 = vmul.f32 %v2691_v20, %v2691_v20 }
0x173d   : > { %v2697_v22 = vsel %vm695_vm4, %v2693_v29, 0.0 }
0x173e   : > { %2698 = vadd.xlane.f32.xlu0 %v2697_v22 }
0x17c3   : > { %v2696_v28 = vpop.xlane.xlu1 %2695 }
0x17c4   : > { %v2700_v30 = vmul.f32 0.03125, %v2696_v28 }
0x17c6   : > { %v2702_v31 = vadd.f32 1e-05, %v2700_v30 }
0x17c7   : > { %v2699_v23 = vpop.xlane.xlu0 %2698 }
0x17c8   : > { %3371 = vrsqrt.f32 %v2702_v31  ;;  %v2701_v24 = vmul.f32 0.03125, %v2699_v23 }
0x17ca   : > { %v2703_v25 = vadd.f32 1e-05, %v2701_v24 }
0x17cc   : > { %3373 = vrsqrt.f32 %v2703_v25 }
0x17d5   : > { %v3372_v34 = vpop.eup %3371 }
0x17d6   : > { %v2706_v27 = vmul.f32 %v3372_v34, %v2690_v16 }
0x17d8   : > { %v2714_v33 = vmul.f32 %v2906_v26, %v2706_v27 }
0x17d9   : > { %v3374_v35 = vpop.eup %3373 }
0x17da   : > { %v2722_v36 = vadd.f32 %v2907_v32, %v2714_v33  ;;  %v2707_v10 = vmul.f32 %v3374_v35, %v2691_v20 }
0x17dc   : > { %2724 = vst.msk [vmem:[%s589_s19] sm:$0xff] %vm691_vm3, %v2722_v36  ;;  %v2715_v52 = vmul.f32 %v2906_v26, %v2707_v10 }
0x17de   : > { %v2723_v37 = vadd.f32 %v2907_v32, %v2715_v52 }
0x17e0   : > { %2725 = vst.msk [vmem:[%s589_s19 + $0x8] sm:$0xf] %vm695_vm4, %v2723_v37 }
0x17e1 PF: > { %s28_s27 = sadd.s32 1, %s3381_s27  }
0x17e2   : > { %p25_p4 = scmp.ge.s32.totalorder %s28_s27, 4  }
0x17e4   :  { %27 = sbr.rel (!%p25_p4) target bundleno = 4 (0x4), region = 137 }

</bundles_post_ra>
